<compile_context>
chip_gen: v7x
topology: tpu7x:2x2x1
jax: 0.10.0
libtpu: 0.0.40
codegen_flags: <defaults>
</compile_context>

<pallas_src>
import functools
import math

import jax
import jax.numpy as jnp
from jax import lax
from jax.experimental import pallas as pl
from jax.experimental.pallas import tpu as pltpu


# ----------------------------------------------------------------------------
# Fused Pallas kernel: `bb` batch elements per grid step.
# ----------------------------------------------------------------------------
def _san_fused_kernel(x_ref, pe_ref, wqkv_ref, wmlp_ref, bmlp_ref,
                      lin_w_ref, lin_b_ref, o_ref, *, residual):
    """Full SAN forward for a block of bb batch elements.

    x_ref:     (bb, S, C)    input activations
    pe_ref:    (S, C)        sinusoidal positional-encoding slice
    wqkv_ref:  (L, C, 3H)    per-layer [Wq*1/sqrt(H) | Wk | Wv]   (bf16)
    wmlp_ref:  (M, H, H)     MLP weights                           (bf16)
    bmlp_ref:  (M, 1, H)     MLP biases                            (f32)
    lin_w_ref: (H, Opad)     final linear, zero-padded lane-dense  (bf16)
    lin_b_ref: (1, Opad)     final bias, zero-padded               (f32)
    o_ref:     (bb, Opad)    lane/sublane-dense output slab
    """
    bb, S, C = x_ref.shape
    L = wqkv_ref.shape[0]
    H = wqkv_ref.shape[2] // 3
    M = wmlp_ref.shape[0]

    # PE add fused into the kernel; flatten tokens so the per-token projections
    # run as one big MXU matmul per layer.
    x = (x_ref[...] + pe_ref[...][None, :, :]).reshape(bb * S, C)  # f32

    # Causal mask (== adding log(tril(ones)) as in the PyTorch module).
    row = lax.broadcasted_iota(jnp.int32, (S, S), 0)
    col = lax.broadcasted_iota(jnp.int32, (S, S), 1)
    causal = (col <= row)[None, :, :]

    for l in range(L):  # static unroll over attention layers
        # (bb*S, C) @ (C, 3H), bf16 operands, f32 accumulation.
        qkv = jnp.dot(x.astype(jnp.bfloat16), wqkv_ref[l],
                      preferred_element_type=jnp.float32)
        q = qkv[:, 0 * H:1 * H].reshape(bb, S, H).astype(jnp.bfloat16)
        k = qkv[:, 1 * H:2 * H].reshape(bb, S, H).astype(jnp.bfloat16)
        v = qkv[:, 2 * H:3 * H].reshape(bb, S, H).astype(jnp.bfloat16)

        # q @ k.T per batch element; 1/sqrt(H) already folded into q columns.
        s = jnp.einsum('bqh,bkh->bqk', q, k,
                       preferred_element_type=jnp.float32)
        s = jnp.where(causal, s, -jnp.inf)

        # Numerically stable softmax; the causal diagonal guarantees >=1
        # unmasked entry per row, so no NaN from exp(-inf - (-inf)).
        s = s - jnp.max(s, axis=-1, keepdims=True)
        p = jnp.exp(s)
        p = p * pl.reciprocal(jnp.sum(p, axis=-1, keepdims=True), approx=True)

        upd = jnp.einsum('bqk,bkh->bqh', p.astype(jnp.bfloat16), v,
                         preferred_element_type=jnp.float32).reshape(bb * S, H)
        x = x + upd if residual else upd

    # Batched epilogue: last token of each element -> (bb, H) slab, then
    # full-width MLP + head matmuls and one dense (bb, Opad) store.
    h = x.reshape(bb, S, H)[:, S - 1, :]                       # (bb, H) f32
    for i in range(M):
        h = jnp.maximum(
            jnp.dot(h.astype(jnp.bfloat16), wmlp_ref[i],
                    preferred_element_type=jnp.float32) + bmlp_ref[i], 0.0)

    o_ref[...] = (jnp.dot(h.astype(jnp.bfloat16), lin_w_ref[...],
                          preferred_element_type=jnp.float32)
                  + lin_b_ref[...])


def san_forward_fused(x, fused, residual=True, *, target_rows=256):
    """Whole SAN forward in one pallas_call, grid over batch blocks."""
    B, S, C = x.shape
    pe = fused["pe_table"][:S, :]
    wqkv, wmlp, bmlp = fused["wqkv"], fused["wmlp"], fused["bmlp"]
    lin_w, lin_b = fused["lin_w_pad"], fused["lin_b_pad"]
    o_pad = lin_w.shape[1]
    out_channels = fused["out_channels"]

    # Batch-block size: bb*S ~ target_rows (256 fills the v6e/v7x MXU; v5e
    # saturates earlier), but keep >= 2 grid steps when B allows so
    # "parallel" can still shard across the two v7x TensorCores.
    bb = max(1, min(B, target_rows // max(S, 1)))
    if B >= 2 and pl.cdiv(B, bb) < 2:
        bb = pl.cdiv(B, 2)
    num_blocks = pl.cdiv(B, bb)
    b_pad = num_blocks * bb
    if b_pad != B:
        x = jnp.concatenate(
            [x, jnp.zeros((b_pad - B, S, C), x.dtype)], axis=0)

    out = pl.pallas_call(
        functools.partial(_san_fused_kernel, residual=residual),
        out_shape=jax.ShapeDtypeStruct((num_blocks, bb, o_pad), jnp.float32),
        grid=(num_blocks,),
        in_specs=[
            pl.BlockSpec((bb, S, C), lambda b: (b, 0, 0)),     # x batch block
            pl.BlockSpec((S, C), lambda b: (0, 0)),            # pe
            pl.BlockSpec(wqkv.shape, lambda b: (0, 0, 0)),     # qkv weights (bf16)
            pl.BlockSpec(wmlp.shape, lambda b: (0, 0, 0)),     # mlp weights (bf16)
            pl.BlockSpec(bmlp.shape, lambda b: (0, 0, 0)),     # mlp biases
            pl.BlockSpec(lin_w.shape, lambda b: (0, 0)),       # head weight (padded)
            pl.BlockSpec(lin_b.shape, lambda b: (0, 0)),       # head bias (padded)
        ],
        out_specs=pl.BlockSpec((None, bb, o_pad), lambda b: (b, 0, 0)),
        compiler_params=pltpu.CompilerParams(
            dimension_semantics=("parallel",),
            vmem_limit_bytes=48 * 1024 * 1024),
    )(x, pe, wqkv, wmlp, bmlp, lin_w, lin_b)

    return out.reshape(b_pad, o_pad)[:B, :out_channels]


# ----------------------------------------------------------------------------
# Parameter construction (plain JAX, done once outside the kernel)
# ----------------------------------------------------------------------------
def sinusoidal_pe_table(max_len, d_model):
    position = jnp.arange(max_len, dtype=jnp.float32)[:, None]
    div_term = jnp.exp(
        jnp.arange(0, d_model, 2, dtype=jnp.float32) * (-math.log(10000.0) / d_model))
    angles = position * div_term
    pe = jnp.zeros((max_len, d_model), dtype=jnp.float32)
    pe = pe.at[:, 0::2].set(jnp.sin(angles))
    pe = pe.at[:, 1::2].set(jnp.cos(angles))
    return pe


def init_san_params(key, in_channels, hidden_channels, out_channels,
                    num_attn_layers=2, num_mlp_layers=3, max_len=5000):
    params = {"pe_table": sinusoidal_pe_table(max_len, in_channels)}
    attn = []
    cin = in_channels
    for _ in range(num_attn_layers):
        key, kq, kk, kv = jax.random.split(key, 4)
        s = 1.0 / math.sqrt(cin)
        attn.append((
            jax.random.uniform(kq, (cin, hidden_channels), jnp.float32, -s, s),
            jax.random.uniform(kk, (cin, hidden_channels), jnp.float32, -s, s),
            jax.random.uniform(kv, (cin, hidden_channels), jnp.float32, -s, s),
        ))
        cin = hidden_channels
    params["attn"] = attn

    mlp = []
    for _ in range(num_mlp_layers):
        key, kw, kb = jax.random.split(key, 3)
        s = 1.0 / math.sqrt(hidden_channels)
        mlp.append((
            jax.random.uniform(kw, (hidden_channels, hidden_channels), jnp.float32, -s, s),
            jax.random.uniform(kb, (1, hidden_channels), jnp.float32, -s, s),
        ))
    params["mlp"] = mlp

    key, kw, kb = jax.random.split(key, 3)
    s = 1.0 / math.sqrt(hidden_channels)
    params["lin_w"] = jax.random.uniform(
        kw, (hidden_channels, out_channels), jnp.float32, -s, s)
    params["lin_b"] = jax.random.uniform(kb, (1, out_channels), jnp.float32, -s, s)
    return params


def prepare_fused_params(params):
    """Pack per-layer weights into the fused/padded (bf16) layout the kernel consumes."""
    attn = params["attn"]
    C, H = attn[0][0].shape
    assert C == H, "fused SAN kernel (and residual add) requires in == hidden channels"
    scale = 1.0 / math.sqrt(H)
    # [Wq/sqrt(H) | Wk | Wv] per layer, stacked -> (L, C, 3H), bf16 MXU operands.
    wqkv = jnp.stack(
        [jnp.concatenate([wq * scale, wk, wv], axis=1) for wq, wk, wv in attn],
        axis=0).astype(jnp.bfloat16)
    wmlp = jnp.stack([w for w, _ in params["mlp"]], axis=0).astype(jnp.bfloat16)
    bmlp = jnp.stack([b for _, b in params["mlp"]], axis=0)          # (M, 1, H) f32

    lin_w, lin_b = params["lin_w"], params["lin_b"]
    out_channels = lin_w.shape[1]
    o_pad = max(128, ((out_channels + 127) // 128) * 128)            # lane-dense store
    lin_w_pad = jnp.zeros((H, o_pad), jnp.float32).at[:, :out_channels].set(
        lin_w).astype(jnp.bfloat16)
    lin_b_pad = jnp.zeros((1, o_pad), jnp.float32).at[:, :out_channels].set(lin_b)

    return {"pe_table": params["pe_table"], "wqkv": wqkv,
            "wmlp": wmlp, "bmlp": bmlp,
            "lin_w_pad": lin_w_pad, "lin_b_pad": lin_b_pad,
            "out_channels": out_channels}


# ----------------------------------------------------------------------------
# Pure-JAX reference (exact f32 softmax / division) for correctness check.
# ----------------------------------------------------------------------------
def san_reference(x, params, residual=True):
    B, S, C = x.shape
    x = x + params["pe_table"][None, :S, :]
    for wq, wk, wv in params["attn"]:
        q, k, v = x @ wq, x @ wk, x @ wv
        scores = jnp.einsum("bqh,bkh->bqk", q, k) / jnp.sqrt(jnp.float32(wq.shape[1]))
        mask = jnp.tril(jnp.ones((S, S), jnp.float32))[None]
        scores = scores + jnp.log(mask)
        attn = jax.nn.softmax(scores, axis=-1)
        update = jnp.einsum("bqk,bkh->bqh", attn, v)
        x = x + update if residual else update
    h = x[:, -1, :]
    for w, b in params["mlp"]:
        h = jnp.maximum(h @ w + b, 0.0)
    return h @ params["lin_w"] + params["lin_b"]


if __name__ == "__main__":
    B, S = 3, 8              # odd B exercises the batch-block padding path
    in_channels = 128        # == hidden_channels (required by the residual add)
    hidden_channels = 128    # module default; lane-dense (multiple of 128)
    out_channels = 8

    key = jax.random.PRNGKey(0)
    key, kx = jax.random.split(key)
    x = jax.random.normal(kx, (B, S, in_channels), dtype=jnp.float32)

    params = init_san_params(key, in_channels, hidden_channels, out_channels)
    fused = prepare_fused_params(params)

    out = jax.block_until_ready(san_forward_fused(x, fused, residual=True))
    ref = jax.block_until_ready(san_reference(x, params, residual=True))

    assert out.shape == (B, out_channels)
    # Tolerance covers bf16 MXU operands (f32 accumulation) + EUP approx reciprocal.
    assert bool(jnp.allclose(out, ref, atol=2e-2, rtol=2e-2)), "mismatch vs reference"

    print("KERNEL_OK")
</pallas_src>

<mosaic_0001>
module attributes {stable_mosaic.version = 11 : i64} {
  func.func @_san_fused_kernel(%arg0: i32, %arg1: memref<2x8x128xf32, #tpu.memory_space<vmem>>, %arg2: memref<8x128xf32, #tpu.memory_space<vmem>>, %arg3: memref<2x128x384xbf16, #tpu.memory_space<vmem>>, %arg4: memref<3x128x128xbf16, #tpu.memory_space<vmem>>, %arg5: memref<3x1x128xf32, #tpu.memory_space<vmem>>, %arg6: memref<128x128xbf16, #tpu.memory_space<vmem>>, %arg7: memref<1x128xf32, #tpu.memory_space<vmem>>, %arg8: memref<1x2x128xf32, #tpu.memory_space<vmem>>) attributes {dimension_semantics = [#tpu.dimension_semantics<parallel>], iteration_bounds = array<i64: 2>, scalar_prefetch = 0 : i64, scratch_operands = 0 : i64, tpu.core_type = #tpu.core_type<tc>, window_params = [{transform_indices = @transform_0, window_bounds = array<i64: 2, 8, 128>}, {pipeline_mode = #tpu.pipeline_mode<synchronous>, transform_indices = @transform_1, window_bounds = array<i64: 8, 128>}, {pipeline_mode = #tpu.pipeline_mode<synchronous>, transform_indices = @transform_2, window_bounds = array<i64: 2, 128, 384>}, {pipeline_mode = #tpu.pipeline_mode<synchronous>, transform_indices = @transform_3, window_bounds = array<i64: 3, 128, 128>}, {pipeline_mode = #tpu.pipeline_mode<synchronous>, transform_indices = @transform_4, window_bounds = array<i64: 3, 1, 128>}, {pipeline_mode = #tpu.pipeline_mode<synchronous>, transform_indices = @transform_5, window_bounds = array<i64: 128, 128>}, {pipeline_mode = #tpu.pipeline_mode<synchronous>, transform_indices = @transform_6, window_bounds = array<i64: 1, 128>}, {transform_indices = @transform_7, window_bounds = array<i64: 1, 2, 128>}]} {
    %c0 = arith.constant 0 : index
    %c0_0 = arith.constant 0 : index
    %c0_1 = arith.constant 0 : index
    %0 = vector.load %arg1[%c0, %c0_0, %c0_1] : memref<2x8x128xf32, #tpu.memory_space<vmem>>, vector<2x8x128xf32>
    %c0_2 = arith.constant 0 : index
    %c0_3 = arith.constant 0 : index
    %1 = vector.load %arg2[%c0_2, %c0_3] : memref<8x128xf32, #tpu.memory_space<vmem>>, vector<8x128xf32>
    %2 = vector.shape_cast %1 : vector<8x128xf32> to vector<1x8x128xf32>
    %3 = vector.broadcast %2 : vector<1x8x128xf32> to vector<2x8x128xf32>
    %4 = arith.addf %0, %3 : vector<2x8x128xf32>
    %5 = vector.shape_cast %4 : vector<2x8x128xf32> to vector<16x128xf32>
    %6 = tpu.iota {dimensions = array<i32: 0>} : vector<8x8xi32>
    %7 = tpu.iota {dimensions = array<i32: 1>} : vector<8x8xi32>
    %8 = arith.cmpi sle, %7, %6 : vector<8x8xi32>
    %9 = vector.shape_cast %8 : vector<8x8xi1> to vector<1x8x8xi1>
    %10 = arith.truncf %5 : vector<16x128xf32> to vector<16x128xbf16>
    %c0_4 = arith.constant 0 : index
    %c0_5 = arith.constant 0 : index
    %c0_6 = arith.constant 0 : index
    %11 = vector.load %arg3[%c0_4, %c0_5, %c0_6] : memref<2x128x384xbf16, #tpu.memory_space<vmem>>, vector<1x128x384xbf16>
    %12 = vector.shape_cast %11 : vector<1x128x384xbf16> to vector<128x384xbf16>
    %cst = arith.constant dense<0.000000e+00> : vector<16x384xf32>
    %13 = tpu.matmul %10, %12, %cst {dimension_numbers = #tpu.dot_dimension_numbers<[1], [0], [0], [1], [0, 0, 1, 1], [], []>} : vector<16x128xbf16>, vector<128x384xbf16>, vector<16x384xf32> -> vector<16x384xf32>
    %14 = vector.extract_strided_slice %13 {offsets = [0, 0], sizes = [16, 128], strides = [1, 1]} : vector<16x384xf32> to vector<16x128xf32>
    %15 = vector.shape_cast %14 : vector<16x128xf32> to vector<2x8x128xf32>
    %16 = arith.truncf %15 : vector<2x8x128xf32> to vector<2x8x128xbf16>
    %17 = vector.extract_strided_slice %13 {offsets = [0, 128], sizes = [16, 128], strides = [1, 1]} : vector<16x384xf32> to vector<16x128xf32>
    %18 = vector.shape_cast %17 : vector<16x128xf32> to vector<2x8x128xf32>
    %19 = arith.truncf %18 : vector<2x8x128xf32> to vector<2x8x128xbf16>
    %20 = vector.extract_strided_slice %13 {offsets = [0, 256], sizes = [16, 128], strides = [1, 1]} : vector<16x384xf32> to vector<16x128xf32>
    %21 = vector.shape_cast %20 : vector<16x128xf32> to vector<2x8x128xf32>
    %22 = arith.truncf %21 : vector<2x8x128xf32> to vector<2x8x128xbf16>
    "tpu.trace_start"() <{level = 10 : i32, message = "bqh,bkh->bqk"}> : () -> ()
    %cst_7 = arith.constant dense<0.000000e+00> : vector<2x8x8xf32>
    %23 = tpu.matmul %16, %19, %cst_7 {dimension_numbers = #tpu.dot_dimension_numbers<[2], [2], [1], [1], [0, 0, 0, 1, 1, 1], [0], [0]>} : vector<2x8x128xbf16>, vector<2x8x128xbf16>, vector<2x8x8xf32> -> vector<2x8x8xf32>
    %cst_8 = arith.constant 0xFF800000 : f32
    "tpu.trace_stop"() : () -> ()
    %24 = vector.shape_cast %9 : vector<1x8x8xi1> to vector<1x8x8xi1>
    %25 = vector.broadcast %24 : vector<1x8x8xi1> to vector<2x8x8xi1>
    %26 = vector.broadcast %cst_8 : f32 to vector<2x8x8xf32>
    %27 = arith.select %25, %23, %26 : vector<2x8x8xi1>, vector<2x8x8xf32>
    %cst_9 = arith.constant dense<0xFF800000> : vector<2x8xf32>
    %28 = vector.multi_reduction <maximumf>, %27, %cst_9 [2] : vector<2x8x8xf32> to vector<2x8xf32>
    %29 = vector.shape_cast %28 : vector<2x8xf32> to vector<2x8x1xf32>
    %30 = vector.broadcast %29 : vector<2x8x1xf32> to vector<2x8x8xf32>
    %31 = arith.subf %27, %30 : vector<2x8x8xf32>
    %32 = math.exp %31 : vector<2x8x8xf32>
    %cst_10 = arith.constant dense<0.000000e+00> : vector<2x8xf32>
    %33 = vector.multi_reduction <add>, %32, %cst_10 [2] : vector<2x8x8xf32> to vector<2x8xf32>
    %34 = vector.shape_cast %33 : vector<2x8xf32> to vector<2x8x1xf32>
    %35 = tpu.reciprocal %34 {approx = true} : vector<2x8x1xf32> -> vector<2x8x1xf32>
    %36 = vector.broadcast %35 : vector<2x8x1xf32> to vector<2x8x8xf32>
    %37 = arith.mulf %32, %36 : vector<2x8x8xf32>
    %38 = arith.truncf %37 : vector<2x8x8xf32> to vector<2x8x8xbf16>
    "tpu.trace_start"() <{level = 10 : i32, message = "bqk,bkh->bqh"}> : () -> ()
    %cst_11 = arith.constant dense<0.000000e+00> : vector<2x8x128xf32>
    %39 = tpu.matmul %38, %22, %cst_11 {dimension_numbers = #tpu.dot_dimension_numbers<[2], [1], [1], [2], [0, 0, 0, 1, 1, 2], [0], [0]>} : vector<2x8x8xbf16>, vector<2x8x128xbf16>, vector<2x8x128xf32> -> vector<2x8x128xf32>
    "tpu.trace_stop"() : () -> ()
    %40 = vector.shape_cast %39 : vector<2x8x128xf32> to vector<16x128xf32>
    %41 = arith.addf %5, %40 : vector<16x128xf32>
    %42 = arith.truncf %41 : vector<16x128xf32> to vector<16x128xbf16>
    %c1 = arith.constant 1 : index
    %c0_12 = arith.constant 0 : index
    %c0_13 = arith.constant 0 : index
    %43 = vector.load %arg3[%c1, %c0_12, %c0_13] : memref<2x128x384xbf16, #tpu.memory_space<vmem>>, vector<1x128x384xbf16>
    %44 = vector.shape_cast %43 : vector<1x128x384xbf16> to vector<128x384xbf16>
    %cst_14 = arith.constant dense<0.000000e+00> : vector<16x384xf32>
    %45 = tpu.matmul %42, %44, %cst_14 {dimension_numbers = #tpu.dot_dimension_numbers<[1], [0], [0], [1], [0, 0, 1, 1], [], []>} : vector<16x128xbf16>, vector<128x384xbf16>, vector<16x384xf32> -> vector<16x384xf32>
    %46 = vector.extract_strided_slice %45 {offsets = [0, 0], sizes = [16, 128], strides = [1, 1]} : vector<16x384xf32> to vector<16x128xf32>
    %47 = vector.shape_cast %46 : vector<16x128xf32> to vector<2x8x128xf32>
    %48 = arith.truncf %47 : vector<2x8x128xf32> to vector<2x8x128xbf16>
    %49 = vector.extract_strided_slice %45 {offsets = [0, 128], sizes = [16, 128], strides = [1, 1]} : vector<16x384xf32> to vector<16x128xf32>
    %50 = vector.shape_cast %49 : vector<16x128xf32> to vector<2x8x128xf32>
    %51 = arith.truncf %50 : vector<2x8x128xf32> to vector<2x8x128xbf16>
    %52 = vector.extract_strided_slice %45 {offsets = [0, 256], sizes = [16, 128], strides = [1, 1]} : vector<16x384xf32> to vector<16x128xf32>
    %53 = vector.shape_cast %52 : vector<16x128xf32> to vector<2x8x128xf32>
    %54 = arith.truncf %53 : vector<2x8x128xf32> to vector<2x8x128xbf16>
    "tpu.trace_start"() <{level = 10 : i32, message = "bqh,bkh->bqk"}> : () -> ()
    %cst_15 = arith.constant dense<0.000000e+00> : vector<2x8x8xf32>
    %55 = tpu.matmul %48, %51, %cst_15 {dimension_numbers = #tpu.dot_dimension_numbers<[2], [2], [1], [1], [0, 0, 0, 1, 1, 1], [0], [0]>} : vector<2x8x128xbf16>, vector<2x8x128xbf16>, vector<2x8x8xf32> -> vector<2x8x8xf32>
    %cst_16 = arith.constant 0xFF800000 : f32
    "tpu.trace_stop"() : () -> ()
    %56 = vector.shape_cast %9 : vector<1x8x8xi1> to vector<1x8x8xi1>
    %57 = vector.broadcast %56 : vector<1x8x8xi1> to vector<2x8x8xi1>
    %58 = vector.broadcast %cst_16 : f32 to vector<2x8x8xf32>
    %59 = arith.select %57, %55, %58 : vector<2x8x8xi1>, vector<2x8x8xf32>
    %cst_17 = arith.constant dense<0xFF800000> : vector<2x8xf32>
    %60 = vector.multi_reduction <maximumf>, %59, %cst_17 [2] : vector<2x8x8xf32> to vector<2x8xf32>
    %61 = vector.shape_cast %60 : vector<2x8xf32> to vector<2x8x1xf32>
    %62 = vector.broadcast %61 : vector<2x8x1xf32> to vector<2x8x8xf32>
    %63 = arith.subf %59, %62 : vector<2x8x8xf32>
    %64 = math.exp %63 : vector<2x8x8xf32>
    %cst_18 = arith.constant dense<0.000000e+00> : vector<2x8xf32>
    %65 = vector.multi_reduction <add>, %64, %cst_18 [2] : vector<2x8x8xf32> to vector<2x8xf32>
    %66 = vector.shape_cast %65 : vector<2x8xf32> to vector<2x8x1xf32>
    %67 = tpu.reciprocal %66 {approx = true} : vector<2x8x1xf32> -> vector<2x8x1xf32>
    %68 = vector.broadcast %67 : vector<2x8x1xf32> to vector<2x8x8xf32>
    %69 = arith.mulf %64, %68 : vector<2x8x8xf32>
    %70 = arith.truncf %69 : vector<2x8x8xf32> to vector<2x8x8xbf16>
    "tpu.trace_start"() <{level = 10 : i32, message = "bqk,bkh->bqh"}> : () -> ()
    %cst_19 = arith.constant dense<0.000000e+00> : vector<2x8x128xf32>
    %71 = tpu.matmul %70, %54, %cst_19 {dimension_numbers = #tpu.dot_dimension_numbers<[2], [1], [1], [2], [0, 0, 0, 1, 1, 2], [0], [0]>} : vector<2x8x8xbf16>, vector<2x8x128xbf16>, vector<2x8x128xf32> -> vector<2x8x128xf32>
    "tpu.trace_stop"() : () -> ()
    %72 = vector.shape_cast %71 : vector<2x8x128xf32> to vector<16x128xf32>
    %73 = arith.addf %41, %72 : vector<16x128xf32>
    %74 = vector.shape_cast %73 : vector<16x128xf32> to vector<2x8x128xf32>
    %75 = vector.extract_strided_slice %74 {offsets = [0, 7, 0], sizes = [2, 1, 128], strides = [1, 1, 1]} : vector<2x8x128xf32> to vector<2x1x128xf32>
    %76 = vector.shape_cast %75 : vector<2x1x128xf32> to vector<2x128xf32>
    %77 = arith.truncf %76 : vector<2x128xf32> to vector<2x128xbf16>
    %c0_20 = arith.constant 0 : index
    %c0_21 = arith.constant 0 : index
    %c0_22 = arith.constant 0 : index
    %78 = vector.load %arg4[%c0_20, %c0_21, %c0_22] : memref<3x128x128xbf16, #tpu.memory_space<vmem>>, vector<1x128x128xbf16>
    %79 = vector.shape_cast %78 : vector<1x128x128xbf16> to vector<128x128xbf16>
    %cst_23 = arith.constant dense<0.000000e+00> : vector<2x128xf32>
    %80 = tpu.matmul %77, %79, %cst_23 {dimension_numbers = #tpu.dot_dimension_numbers<[1], [0], [0], [1], [0, 0, 1, 1], [], []>} : vector<2x128xbf16>, vector<128x128xbf16>, vector<2x128xf32> -> vector<2x128xf32>
    %c0_24 = arith.constant 0 : index
    %c0_25 = arith.constant 0 : index
    %c0_26 = arith.constant 0 : index
    %81 = vector.load %arg5[%c0_24, %c0_25, %c0_26] : memref<3x1x128xf32, #tpu.memory_space<vmem>>, vector<1x1x128xf32>
    %82 = vector.shape_cast %81 : vector<1x1x128xf32> to vector<1x128xf32>
    %83 = vector.broadcast %82 : vector<1x128xf32> to vector<2x128xf32>
    %84 = arith.addf %80, %83 : vector<2x128xf32>
    %cst_27 = arith.constant 0.000000e+00 : f32
    %85 = vector.broadcast %cst_27 : f32 to vector<2x128xf32>
    %86 = arith.maximumf %84, %85 : vector<2x128xf32>
    %87 = arith.truncf %86 : vector<2x128xf32> to vector<2x128xbf16>
    %c1_28 = arith.constant 1 : index
    %c0_29 = arith.constant 0 : index
    %c0_30 = arith.constant 0 : index
    %88 = vector.load %arg4[%c1_28, %c0_29, %c0_30] : memref<3x128x128xbf16, #tpu.memory_space<vmem>>, vector<1x128x128xbf16>
    %89 = vector.shape_cast %88 : vector<1x128x128xbf16> to vector<128x128xbf16>
    %cst_31 = arith.constant dense<0.000000e+00> : vector<2x128xf32>
    %90 = tpu.matmul %87, %89, %cst_31 {dimension_numbers = #tpu.dot_dimension_numbers<[1], [0], [0], [1], [0, 0, 1, 1], [], []>} : vector<2x128xbf16>, vector<128x128xbf16>, vector<2x128xf32> -> vector<2x128xf32>
    %c1_32 = arith.constant 1 : index
    %c0_33 = arith.constant 0 : index
    %c0_34 = arith.constant 0 : index
    %91 = vector.load %arg5[%c1_32, %c0_33, %c0_34] : memref<3x1x128xf32, #tpu.memory_space<vmem>>, vector<1x1x128xf32>
    %92 = vector.shape_cast %91 : vector<1x1x128xf32> to vector<1x128xf32>
    %93 = vector.broadcast %92 : vector<1x128xf32> to vector<2x128xf32>
    %94 = arith.addf %90, %93 : vector<2x128xf32>
    %cst_35 = arith.constant 0.000000e+00 : f32
    %95 = vector.broadcast %cst_35 : f32 to vector<2x128xf32>
    %96 = arith.maximumf %94, %95 : vector<2x128xf32>
    %97 = arith.truncf %96 : vector<2x128xf32> to vector<2x128xbf16>
    %c2 = arith.constant 2 : index
    %c0_36 = arith.constant 0 : index
    %c0_37 = arith.constant 0 : index
    %98 = vector.load %arg4[%c2, %c0_36, %c0_37] : memref<3x128x128xbf16, #tpu.memory_space<vmem>>, vector<1x128x128xbf16>
    %99 = vector.shape_cast %98 : vector<1x128x128xbf16> to vector<128x128xbf16>
    %cst_38 = arith.constant dense<0.000000e+00> : vector<2x128xf32>
    %100 = tpu.matmul %97, %99, %cst_38 {dimension_numbers = #tpu.dot_dimension_numbers<[1], [0], [0], [1], [0, 0, 1, 1], [], []>} : vector<2x128xbf16>, vector<128x128xbf16>, vector<2x128xf32> -> vector<2x128xf32>
    %c2_39 = arith.constant 2 : index
    %c0_40 = arith.constant 0 : index
    %c0_41 = arith.constant 0 : index
    %101 = vector.load %arg5[%c2_39, %c0_40, %c0_41] : memref<3x1x128xf32, #tpu.memory_space<vmem>>, vector<1x1x128xf32>
    %102 = vector.shape_cast %101 : vector<1x1x128xf32> to vector<1x128xf32>
    %103 = vector.broadcast %102 : vector<1x128xf32> to vector<2x128xf32>
    %104 = arith.addf %100, %103 : vector<2x128xf32>
    %cst_42 = arith.constant 0.000000e+00 : f32
    %105 = vector.broadcast %cst_42 : f32 to vector<2x128xf32>
    %106 = arith.maximumf %104, %105 : vector<2x128xf32>
    %107 = arith.truncf %106 : vector<2x128xf32> to vector<2x128xbf16>
    %c0_43 = arith.constant 0 : index
    %c0_44 = arith.constant 0 : index
    %108 = vector.load %arg6[%c0_43, %c0_44] : memref<128x128xbf16, #tpu.memory_space<vmem>>, vector<128x128xbf16>
    %cst_45 = arith.constant dense<0.000000e+00> : vector<2x128xf32>
    %109 = tpu.matmul %107, %108, %cst_45 {dimension_numbers = #tpu.dot_dimension_numbers<[1], [0], [0], [1], [0, 0, 1, 1], [], []>} : vector<2x128xbf16>, vector<128x128xbf16>, vector<2x128xf32> -> vector<2x128xf32>
    %c0_46 = arith.constant 0 : index
    %c0_47 = arith.constant 0 : index
    %110 = vector.load %arg7[%c0_46, %c0_47] : memref<1x128xf32, #tpu.memory_space<vmem>>, vector<1x128xf32>
    %111 = vector.broadcast %110 : vector<1x128xf32> to vector<2x128xf32>
    %112 = arith.addf %109, %111 : vector<2x128xf32>
    %c0_48 = arith.constant 0 : index
    %c0_49 = arith.constant 0 : index
    %c0_50 = arith.constant 0 : index
    %113 = vector.load %arg8[%c0_48, %c0_49, %c0_50] : memref<1x2x128xf32, #tpu.memory_space<vmem>>, vector<1x2x128xf32>
    %114 = vector.shape_cast %113 : vector<1x2x128xf32> to vector<2x128xf32>
    %115 = vector.shape_cast %112 : vector<2x128xf32> to vector<1x2x128xf32>
    tpu.vector_store %arg8[%c0_48, %c0_49, %c0_50], %115 {strides = array<i32>} : memref<1x2x128xf32, #tpu.memory_space<vmem>>, vector<1x2x128xf32>,
    return
  }
  func.func @transform_0(%arg0: i32) -> (i32, i32, i32) {
    %c0_i32 = arith.constant 0 : i32
    %c0_i32_0 = arith.constant 0 : i32
    %c0_i32_1 = arith.constant 0 : i32
    return %arg0, %c0_i32, %c0_i32_0 : i32, i32, i32
  }
  func.func @transform_1(%arg0: i32) -> (i32, i32) {
    %c0_i32 = arith.constant 0 : i32
    %c0_i32_0 = arith.constant 0 : i32
    %c0_i32_1 = arith.constant 0 : i32
    return %c0_i32, %c0_i32_0 : i32, i32
  }
  func.func @transform_2(%arg0: i32) -> (i32, i32, i32) {
    %c0_i32 = arith.constant 0 : i32
    %c0_i32_0 = arith.constant 0 : i32
    %c0_i32_1 = arith.constant 0 : i32
    %c0_i32_2 = arith.constant 0 : i32
    return %c0_i32, %c0_i32_0, %c0_i32_1 : i32, i32, i32
  }
  func.func @transform_3(%arg0: i32) -> (i32, i32, i32) {
    %c0_i32 = arith.constant 0 : i32
    %c0_i32_0 = arith.constant 0 : i32
    %c0_i32_1 = arith.constant 0 : i32
    %c0_i32_2 = arith.constant 0 : i32
    return %c0_i32, %c0_i32_0, %c0_i32_1 : i32, i32, i32
  }
  func.func @transform_4(%arg0: i32) -> (i32, i32, i32) {
    %c0_i32 = arith.constant 0 : i32
    %c0_i32_0 = arith.constant 0 : i32
    %c0_i32_1 = arith.constant 0 : i32
    %c0_i32_2 = arith.constant 0 : i32
    return %c0_i32, %c0_i32_0, %c0_i32_1 : i32, i32, i32
  }
  func.func @transform_5(%arg0: i32) -> (i32, i32) {
    %c0_i32 = arith.constant 0 : i32
    %c0_i32_0 = arith.constant 0 : i32
    %c0_i32_1 = arith.constant 0 : i32
    return %c0_i32, %c0_i32_0 : i32, i32
  }
  func.func @transform_6(%arg0: i32) -> (i32, i32) {
    %c0_i32 = arith.constant 0 : i32
    %c0_i32_0 = arith.constant 0 : i32
    %c0_i32_1 = arith.constant 0 : i32
    return %c0_i32, %c0_i32_0 : i32, i32
  }
  func.func @transform_7(%arg0: i32) -> (i32, i32, i32) {
    %c0_i32 = arith.constant 0 : i32
    %c0_i32_0 = arith.constant 0 : i32
    %c0_i32_1 = arith.constant 0 : i32
    return %arg0, %c0_i32, %c0_i32_0 : i32, i32, i32
  }
}

</mosaic_0001>

<bundles_post_ra>
// kernel: tpu_custom_call.1
= control target key start
LH: loop header
LB: loop body
LE: loop exit
PB: predicated region body
PF: predicated region fallthrough
CT: control target
= control target key end

     0   :  { %s3119_s0 = inlined_call_operand.hbm [shape: f32[4,8,128], index: 0, kind: input, shape index: {}]   ;;  %s3120_s1 = inlined_call_operand.hbm [shape: f32[8,128], index: 1, kind: input, shape index: {}]   ;;  %s3121_s2 = inlined_call_operand.hbm [shape: bf16[2,128,384], index: 2, kind: input, shape index: {}]   ;;  %s3122_s3 = inlined_call_operand.hbm [shape: bf16[3,128,128], index: 3, kind: input, shape index: {}]   ;;  %s3123_s4 = inlined_call_operand.vmem [shape: f32[3,1,128], index: 4, kind: input, shape index: {}]   ;;  %s3124_s5 = inlined_call_operand.hbm [shape: bf16[128,128], index: 5, kind: input, shape index: {}]   ;;  %s3125_s6 = inlined_call_operand.vmem [shape: f32[1,128], index: 6, kind: input, shape index: {}]   ;;  %s3126_s7 = inlined_call_operand.hbm [shape: f32[2,2,128], index: 7, kind: output, shape index: {}]  }
   0x1   :  { %3132 = sst [smem:[#allocation16_spill]] %s3120_s1 }
   0x2   :  { %12 = vsyncpa [#allocation3], 0 }
   0x3   :  { %14 = vsyncpa [#allocation3 + $0x1], 0 }
   0x4   :  { %15 = vsyncpa [#allocation6], 0 }
   0x5   :  { %16 = vsyncpa [#allocation9], 0 }
   0x6   :  { %17 = vsyncpa [#allocation4], 0 }
   0x7   :  { %19 = vsyncpa [#allocation4 + $0x1], 0  ;;  %s2692_s24 = smov 0   ;;  %s2694_s25 = smov 0  }
   0x8   :  { %s2696_s26 = smov 0   ;;  %s2698_s27 = smov 0  }
   0x9 LB: > { %s2713_s28 = sadd.s32 4294967295, %s2635_s27   ;;  %s1861_s29 = sadd.s32 4294967294, %s2635_s27   ;;  %s2635_s27 = sphi %s2698_s27, %s3155_s27   ;;  %s2631_s26 = sphi %s2696_s26, %s3154_s26   ;;  %s2627_s25 = sphi %s2694_s25, %s3153_s25   ;;  %s2623_s24 = sphi %s2692_s24, %s3152_s24  }
   0xa   : > { %p45_p0 = scmp.ne.s32.totalorder %s2627_s25, %s2623_s24  ;;  %p3127_p1 = scmp.eq.s32.totalorder %s2713_s28, 0 }
   0xb   : > { %p201_p3 = scmp.eq.s32.totalorder %s1861_s29, 1  ;;  %p1862_p5 = scmp.ge.s32.totalorder %s2635_s27, 1 }
   0xc   : > { %p2722_p4 = por %p3127_p1, %p45_p0  ;;  %p208_p7 = scmp.lt.s32.totalorder %s2635_s27, 3 }
   0xd   : > { %p2727_p6 = por %p201_p3, %p45_p0  ;;  %s2637_s10 = smov [#allocation5]  }
   0xe   : > { %s3133_s30 = scalar_select %p2722_p4, 1, 0 }
   0xf   : > { %s3134_s8 = scalar_select %p2727_p6, 1, 0 }
  0x10   : > { %p2732_p8 = pnand %p1862_p5, %p208_p7  ;;  %s221_s11 = sshll.u32 %s2637_s10, 4  ;;  %s222_s11 = int_to_ptr.vmem [resolvable:$true] %s221_s11 }
  0x11   : > { %s2638_s12 = smov [#allocation8]   ;;  %s2639_s15 = smov [#allocation7]  }
  0x12   : > { %s3135_s9 = scalar_select %p2732_p8, 1, 0 }
  0x13   : > { %p2231_p10 = pneg %p2732_p8  ;;  %s244_s13 = sshll.u32 %s2638_s12, 4  ;;  %s2745_s13 = int_to_ptr.vmem [resolvable:$true] %s244_s13 }
  0x14   : > { %s2747_s16 = sshll.u32 %s2639_s15, 4  ;;  %s3137_s1 = sld [smem:[#allocation16_spill]]  ;;  %s232_s16 = int_to_ptr.vmem [resolvable:$true] %s2747_s16 }
  0x15   : > { %p2741_p11 = pnand %p2231_p10, %p3127_p1 }
  0x17   : > { %p2757_p13 = pneg %p2741_p11 }
  0x1a   : > { %s2419_s19 = scalar_lea.hbm %s3137_s1, 128 }
  0x1b   : > { %p2420_p12 = scmp.ne.s32.totalorder %s3137_s1, %s2419_s19  ;;  %p2426_p5 = scmp.lt.u32.totalorder %s2419_s19, %s3137_s1 }
  0x1d   : > { %p2422_p0 = pnand %p2757_p13, %p2420_p12 }
  0x1f   : > { %p2423_p3 = pneg %p2422_p0 }
  0x21   : > { %p2428_p7 = pnand %p2426_p5, %p2423_p3 }
  0x23   : > { %2431 = shalt.err (!%p2428_p7)
}
  0x24   : > { %s2432_s10 = scalar_lea.vmem %s222_s11, 128  ;;  %p2440_p2 = scmp.lt.s32.totalorder %s222_s11, %s222_s11 }
  0x25   : > { %p2433_p10 = scmp.ne.s32.totalorder %s222_s11, %s2432_s10  ;;  %p2441_p6 = scmp.lt.s32.totalorder %s2432_s10, %s2432_s10 }
  0x27   : > { %p2435_p9 = pnand %p2433_p10, %p2757_p13  ;;  %p2442_p4 = por %p2441_p6, %p2440_p2 }
  0x29   : > { %p2436_p1 = pneg %p2435_p9 }
  0x2b   : > { %p2443_p8 = pnand %p2442_p4, %p2436_p1 }
  0x2d   : > { %2446 = shalt.err (!%p2443_p8)
}
  0x2e   : > { %2234 = dma.hbm_to_vmem [thread:$0]  (!%p2741_p11), %s3137_s1, 128, %s222_s11, [#allocation6]  }
  0x2f   : > { %s2447_s19 = scalar_lea.hbm %s3122_s3, 3072 }
  0x30   : > { %p2448_p9 = scmp.ne.s32.totalorder %s3122_s3, %s2447_s19  ;;  %p2454_p1 = scmp.lt.u32.totalorder %s2447_s19, %s3122_s3 }
  0x32   : > { %p2450_p12 = pnand %p2448_p9, %p2757_p13 }
  0x34   : > { %p2451_p2 = pneg %p2450_p12 }
  0x36   : > { %p2456_p4 = pnand %p2454_p1, %p2451_p2 }
  0x38   : > { %2459 = shalt.err (!%p2456_p4)
}
  0x39   : > { %s2460_s11 = scalar_lea.vmem %s2745_s13, 3072  ;;  %p2468_p3 = scmp.lt.s32.totalorder %s2745_s13, %s2745_s13 }
  0x3a   : > { %p2461_p6 = scmp.ne.s32.totalorder %s2745_s13, %s2460_s11  ;;  %p2469_p5 = scmp.lt.s32.totalorder %s2460_s11, %s2460_s11 }
  0x3c   : > { %p2463_p8 = pnand %p2461_p6, %p2757_p13  ;;  %p2470_p7 = por %p2469_p5, %p2468_p3 }
  0x3e   : > { %p2464_p0 = pneg %p2463_p8 }
  0x40   : > { %p2471_p10 = pnand %p2470_p7, %p2464_p0 }
  0x42   : > { %2474 = shalt.err (!%p2471_p10)
}
  0x43   : > { %s3130_s10 = smov 64   ;;  %s3131_s12 = smov 4  }
  0x44   : > { %2240 = dma.hbm_to_vmem [thread:$0]  (!%p2741_p11), %s3122_s3, 3072, %s2745_s13, [#allocation9], %s3130_s10, %s3130_s10, %s3131_s12  }
  0x45   : > { %s2475_s20 = scalar_lea.hbm %s3121_s2, 6144 }
  0x46   : > { %p2476_p9 = scmp.ne.s32.totalorder %s3121_s2, %s2475_s20  ;;  %p2482_p1 = scmp.lt.u32.totalorder %s2475_s20, %s3121_s2 }
  0x48   : > { %p2478_p12 = pnand %p2476_p9, %p2757_p13 }
  0x4a   : > { %p2479_p2 = pneg %p2478_p12 }
  0x4c   : > { %p2484_p4 = pnand %p2482_p1, %p2479_p2 }
  0x4e   : > { %2487 = shalt.err (!%p2484_p4)
}
  0x4f   : > { %s2488_s15 = scalar_lea.vmem %s232_s16, 6144  ;;  %p2496_p3 = scmp.lt.s32.totalorder %s232_s16, %s232_s16 }
  0x50   : > { %p2489_p6 = scmp.ne.s32.totalorder %s232_s16, %s2488_s15  ;;  %p2497_p5 = scmp.lt.s32.totalorder %s2488_s15, %s2488_s15 }
  0x52   : > { %p2491_p8 = pnand %p2489_p6, %p2757_p13  ;;  %p2498_p7 = por %p2497_p5, %p2496_p3 }
  0x54   : > { %p2492_p0 = pneg %p2491_p8 }
  0x56   : > { %p2499_p10 = pnand %p2498_p7, %p2492_p0 }
  0x58   : > { %2502 = shalt.err (!%p2499_p10)
}
  0x59   : > { %s2642_s13 = smov 192   ;;  %s2643_s17 = smov 12  }
  0x5a   : > { %2237 = dma.hbm_to_vmem [thread:$0]  (!%p2741_p11), %s3121_s2, 6144, %s232_s16, [#allocation6], %s2642_s13, %s2642_s13, %s2643_s17  }
  0x5b   : > { %s2644_s20 = smov [#allocation10]   ;;  %s2503_s11 = scalar_lea.hbm %s3124_s5, 1024 }
  0x5c   : > { %s260_s21 = sshll.u32 %s2644_s20, 4  ;;  %p2504_p9 = scmp.ne.s32.totalorder %s3124_s5, %s2503_s11  ;;  %s261_s21 = int_to_ptr.vmem [resolvable:$true] %s260_s21 }
  0x5d   : > { %p2510_p1 = scmp.lt.u32.totalorder %s2503_s11, %s3124_s5 }
  0x5e   : > { %p2506_p12 = pnand %p2504_p9, %p2757_p13 }
  0x60   : > { %p2507_p2 = pneg %p2506_p12 }
  0x62   : > { %p2512_p4 = pnand %p2510_p1, %p2507_p2 }
  0x64   : > { %2515 = shalt.err (!%p2512_p4)
}
  0x65   : > { %s2516_s16 = scalar_lea.vmem %s261_s21, 1024  ;;  %p2524_p3 = scmp.lt.s32.totalorder %s261_s21, %s261_s21 }
  0x66   : > { %p2517_p6 = scmp.ne.s32.totalorder %s261_s21, %s2516_s16  ;;  %p2525_p5 = scmp.lt.s32.totalorder %s2516_s16, %s2516_s16 }
  0x68   : > { %p2519_p8 = pnand %p2517_p6, %p2757_p13  ;;  %p2526_p7 = por %p2525_p5, %p2524_p3 }
  0x6a   : > { %p2520_p0 = pneg %p2519_p8 }
  0x6c   : > { %p2527_p10 = pnand %p2526_p7, %p2520_p0 }
  0x6e   : > { %2530 = shalt.err (!%p2527_p10)
}
  0x6f   : > { %s3139_s10 = smov 4   ;;  %s3140_s13 = smov 64  }
  0x70   : > { %2243 = dma.hbm_to_vmem [thread:$0]  (!%p2741_p11), %s3124_s5, 1024, %s261_s21, [#allocation9], %s3140_s13, %s3140_s13, %s3139_s10  }
  0x71   : > { %s2840_s22 = sadd.s32 1, %s2635_s27   ;;  %s32_s14 = sadd.s32 1, %s2631_s26 }
  0x72   : > { %s29_s17 = ssub.s32 %s2635_s27, %s2840_s22  ;;  %p39_p13 = scmp.ne.s32.totalorder %s2631_s26, %s2627_s25 }
  0x73   : > { %p30_p9 = scmp.eq.s32.totalorder %s29_s17, 0  ;;  %p40_p12 = scmp.eq.s32.totalorder %s2635_s27, 0 }
  0x74   : > { %p3141_p2 = scmp.eq.s32.totalorder %s2713_s28, 1  ;;  %p2256_p4 = scmp.lt.s32.totalorder %s2635_s27, 2 }
  0x75   : > { %s2856_s19 = scalar_select %p30_p9, %s2631_s26, %s32_s14  }
  0x76   : > { %p2850_p1 = por %p3141_p2, %p39_p13  ;;  %p41_p6 = por %p40_p12, %p39_p13 }
  0x77   : > { %s277_s20 = sand.u32 1, %s2631_s26   ;;  %s1972_s21 = sshll.u32 %s2635_s27, 8 }
  0x78   : > { %s1868_s23 = sshll.u32 %s277_s20, 4  ;;  %s2863_s15 = scalar_lea.hbm %s3119_s0, %s1972_s21 }
  0x79   : > { %s281_s16 = scalar_lea.vmem [#allocation2], %s1868_s23  ;;  %p2867_p11 = pnand %p2256_p4, %p41_p6 }
  0x7a   : > { %s288_s10 = sshll.u32 %s281_s16, 4  ;;  %s2871_s1 = scalar_lea.sflag [#allocation3], %s277_s20  ;;  %s2865_s10 = int_to_ptr.vmem [resolvable:$true] %s288_s10 }
  0x7b   : > { %s2531_s12 = scalar_lea.hbm %s2863_s15, 256  ;;  %p2533_p0 = pneg %p2867_p11 }
  0x7c   : > { %p2532_p8 = scmp.ne.s32.totalorder %s2863_s15, %s2531_s12  ;;  %s2536_s23 = scalar_lea.hbm %s3119_s0, 512 }
  0x7d   : > { %p2537_p7 = scmp.lt.u32.totalorder %s2863_s15, %s3119_s0  ;;  %p2538_p10 = scmp.lt.u32.totalorder %s2536_s23, %s2531_s12 }
  0x7e   : > { %p2534_p3 = pnand %p2533_p0, %p2532_p8  ;;  %p2540_p9 = scmp.lt.u32.totalorder %s2531_s12, %s2863_s15 }
  0x7f   : > { %p2539_p13 = por %p2538_p10, %p2537_p7 }
  0x80   : > { %p2535_p5 = pneg %p2534_p3 }
  0x81   : > { %p2541_p12 = por %p2540_p9, %p2539_p13 }
  0x83   : > { %p2542_p2 = pnand %p2541_p12, %p2535_p5 }
  0x85   : > { %2545 = shalt.err (!%p2542_p2)
}
  0x86   : > { %s2546_s20 = scalar_lea.vmem %s2865_s10, 256  ;;  %s2645_s11 = smov [#allocation2]  }
  0x87   : > { %p2547_p4 = scmp.ne.s32.totalorder %s2865_s10, %s2546_s20  ;;  %s2551_s16 = sshll.u32 %s2645_s11, 4  ;;  %s2552_s16 = int_to_ptr.vmem [resolvable:$false] %s2551_s16 }
  0x88   : > { %s2553_s14 = scalar_lea.vmem %s2552_s16, 512  ;;  %p2554_p3 = scmp.lt.s32.totalorder %s2865_s10, %s2552_s16 }
  0x89   : > { %p2549_p6 = pnand %p2547_p4, %p2533_p0  ;;  %p2555_p7 = scmp.lt.s32.totalorder %s2553_s14, %s2546_s20 }
  0x8b   : > { %p2550_p8 = pneg %p2549_p6  ;;  %p2556_p10 = por %p2555_p7, %p2554_p3 }
  0x8d   : > { %p2557_p13 = pnand %p2556_p10, %p2550_p8 }
  0x8f   : > { %2560 = shalt.err (!%p2557_p13)
}
  0x90   : > { %s2646_s12 = smov 128   ;;  %s2647_s17 = smov 8  }
  0x91   : > { %2247 = dma.hbm_to_vmem [thread:$0]  (!%p2867_p11), %s2863_s15, 256, %s2865_s10, %s2871_s1, %s2646_s12, %s2646_s12, %s2647_s17  }
  0x92   : > { %p3144_p0 = scmp.ne.s32.totalorder %s3135_s9, 0 }
  0x93   : > { %s2902_s23 = sand.u32 (!%p3144_p0), 1, %s2627_s25   ;;  %p3145_p5 = scmp.ne.s32.totalorder (!%p3144_p0), %s3133_s30, 0 }
  0x94   : > { %300 = sbr.rel (%p3144_p0) target bundleno = 3026 (0xbd2), region = 48  ;;  %s1872_s21 = sshll.u32 (!%p3144_p0), %s2902_s23, 4 }
  0x95   : > { %s303_s29 = scalar_lea.sflag (!%p3144_p0), [#allocation3], %s2902_s23  ;;  %s2906_s20 = scalar_lea.vmem (!%p3144_p0), [#allocation2], %s1872_s21 }
  0x9b   : > { %2606 = dma.done.wait (%p3145_p5), %s303_s29, 256  }
  0x9c   : > { %2608 = vsyncadd (%p3145_p5), %s303_s29, 4294967040  ;;  %p3146_p11 = scmp.eq.s32.totalorder %s2713_s28, 0 }
  0x9e   : > { %2610 = dma.done.wait (%p3146_p11), [#allocation6], 6272   ;;  %p3147_p9 = pmov %p3146_p11 }
  0xa0   : > { %2612 = vsyncadd (%p3147_p9), [#allocation6], 4294961024  ;;  %p3148_p12 = pmov %p3147_p9 }
  0xa1   : > { %p3149_p2 = pmov %p3147_p9 }
  0xa2   : > { %2614 = dma.done.wait (%p3148_p12), [#allocation9], 4096  }
  0xa3   : > { %2616 = vsyncadd (%p3149_p2), [#allocation9], 4294963200  ;;  %v2648_v0 = vmov 0   ;;  %v2649_v1 = vmov 0.0   ;;  %v2307_v2 = vld [vmem:[#allocation7 + $0x4] ss:$12 sps:$4 sm:$0xff]   ;;  %v360_v48 = vlaneseq }
  0xa4   : > { %558 = vmatprep.mubr.bf16.mxu0 %v2648_v0  ;;  %2043 = vmatprep.subr.bf16.mxu1 %v2649_v1  ;;  %v2309_v3 = vld [vmem:[#allocation7] ss:$12 sps:$4 sm:$0xff]   ;;  %v2310_v4 = vld [vmem:[#allocation7 + $0x1c] ss:$12 sps:$4 sm:$0xff]   ;;  %v2312_v5 = vld [vmem:[#allocation7 + $0x18] ss:$12 sps:$4 sm:$0xff]  }
  0xa5   : > { %526 = vmatprep.subr.bf16.mxu0 %v2307_v2  ;;  %v2313_v6 = vld [vmem:[#allocation7 + $0x34] ss:$12 sps:$4 sm:$0xff]   ;;  %v2315_v7 = vld [vmem:[#allocation7 + $0x30] ss:$12 sps:$4 sm:$0xff]   ;;  %v2316_v8 = vld [vmem:[#allocation7 + $0x4c] ss:$12 sps:$4 sm:$0xff]  }
  0xa6   : > { %527 = vmatpush1.bf16.msra.mxu0 %v2309_v3  ;;  %v2318_v9 = vld [vmem:[#allocation7 + $0x48] ss:$12 sps:$4 sm:$0xff]   ;;  %v2319_v10 = vld [vmem:[#allocation7 + $0x64] ss:$12 sps:$4 sm:$0xff]   ;;  %v2332_v12 = vld [vmem:[#allocation7 + $0x20] ss:$12 sps:$4 sm:$0xff]  }
  0xa7   : > { %528 = vmatprep.subr.bf16.mxu0 %v2310_v4  ;;  %v2331_v11 = vld [vmem:[#allocation7 + $0x8] ss:$12 sps:$4 sm:$0xff]   ;;  %v2321_v13 = vld [vmem:[#allocation7 + $0x60] ss:$12 sps:$4 sm:$0xff]   ;;  %v2324_v15 = vld [vmem:[#allocation7 + $0x78] ss:$12 sps:$4 sm:$0xff]  }
  0xa8   : > { %2044 = vmatpush3.bf16.msra.mxu1 %v2331_v11  ;;  %v2322_v14 = vld [vmem:[#allocation7 + $0x7c] ss:$12 sps:$4 sm:$0xff]   ;;  %v2333_v16 = vld [vmem:[#allocation7 + $0x38] ss:$12 sps:$4 sm:$0xff]   ;;  %v2325_v17 = vld [vmem:[#allocation7 + $0x94] ss:$12 sps:$4 sm:$0xff]  }
  0xa9   : > { %2045 = vmatprep.subr.bf16.mxu1 %v2649_v1  ;;  %v2334_v18 = vld [vmem:[#allocation7 + $0x50] ss:$12 sps:$4 sm:$0xff]   ;;  %v2328_v23 = vld [vmem:[#allocation7 + $0xac] ss:$12 sps:$4 sm:$0xff]   ;;  %v2335_v24 = vld [vmem:[#allocation7 + $0x68] ss:$12 sps:$4 sm:$0xff]  }
  0xaa   : > { %529 = vmatpush1.bf16.msra.mxu0 %v2312_v5  ;;  %v2327_v19 = vld [vmem:[#allocation7 + $0x90] ss:$12 sps:$4 sm:$0xff]   ;;  %v2330_v25 = vld [vmem:[#allocation7 + $0xa8] ss:$12 sps:$4 sm:$0xff]   ;;  %v2336_v28 = vld [vmem:[#allocation7 + $0x80] ss:$12 sps:$4 sm:$0xff]  }
  0xab   : > { %530 = vmatprep.subr.bf16.mxu0 %v2313_v6  ;;  %v355_v20 = vld [vmem:[%s2906_s20] sm:$0xff]  ;;  %v356_v21 = vld [vmem:[%s2906_s20 + $0x8] sm:$0xff]  ;;  %vm2650_vm0 = vmmov 0   ;;  %vm728_vm1 = vcmask 1043456   ;;  %v2954_v49 = vshrl.u32 %v360_v48, 7  ;;  %v2956_v50 = vand.u32 127, %v360_v48 }
  0xac   : > { %2046 = vmatpush3.bf16.msra.mxu1 %v2332_v12  ;;  %v357_v22 = vld [vmem:[#allocation5] sm:$0xff]  ;;  %2059 = vmatprep.mubr.msk.bf16.mxu1 %vm2650_vm0, %v2649_v1  ;;  %vm700_vm3 = vcmask 64512   ;;  %v2341_v11 = vld [vmem:[#allocation7 + $0xc4] ss:$12 sps:$4 sm:$0xff]   ;;  %vm1303_vm4 = vcmask 1041409   ;;  %s1877_s11 = sshll.u32 %s2902_s23, 1 }
  0xad   : > { %2047 = vmatprep.subr.bf16.mxu1 %v2649_v1  ;;  %v2927_v26 = vadd.f32 %v357_v22, %v355_v20  ;;  %v2929_v27 = vadd.f32 %v357_v22, %v356_v21  ;;  %v2337_v30 = vld [vmem:[#allocation7 + $0x98] ss:$12 sps:$4 sm:$0xff]   ;;  %v2338_v31 = vld [vmem:[#allocation7 + $0xb0] ss:$12 sps:$4 sm:$0xff]   ;;  %vm364_vm2 = vcmp.le.s32.totalorder %v2956_v50, %v2954_v49  ;;  %v2342_v21 = vld [vmem:[#allocation7 + $0xc8] ss:$12 sps:$4 sm:$0xff]  }
  0xae   : > { %531 = vmatpush1.bf16.msra.mxu0 %v2315_v7  ;;  %v2343_v22 = vld [vmem:[#allocation7 + $0xd8] ss:$12 sps:$4 sm:$0xff]   ;;  %s1969_s12 = sshll.u32 %s2713_s28, 5  ;;  %s352_s17 = scalar_lea.vmem [#allocation11], %s1877_s11 }
  0xaf   : > { %532 = vmatprep.subr.bf16.mxu0 %v2316_v8  ;;  %v365_v29 = vpack.c.bf16 %v2929_v27, %v2927_v26  ;;  %s1753_s21 = sshll.u32 %s352_s17, 4  ;;  %s3075_s30 = scalar_lea.hbm %s3126_s7, %s1969_s12  ;;  %s3077_s21 = int_to_ptr.vmem [resolvable:$true] %s1753_s21 }
  0xb0   : > { %2048 = vmatpush3.bf16.msra.mxu1 %v2333_v16  ;;  %v2339_v16 = vld [vmem:[#allocation7 + $0xc0] ss:$12 sps:$4 sm:$0xff]   ;;  %s1740_s9 = scalar_lea.sflag [#allocation4], %s2902_s23  ;;  %s2561_s28 = scalar_lea.vmem %s3077_s21, 32 }
  0xb1   : > { %2049 = vmatprep.subr.bf16.mxu1 %v2649_v1  ;;  %p2562_p4 = scmp.ne.s32.totalorder %s3077_s21, %s2561_s28  ;;  %s2651_s15 = smov [#allocation11]  }
  0xb2   : > { %533 = vmatpush1.bf16.msra.mxu0 %v2318_v9  ;;  %s2565_s10 = sshll.u32 %s2651_s15, 4  ;;  %s2566_s10 = int_to_ptr.vmem [resolvable:$false] %s2565_s10 }
  0xb3   : > { %534 = vmatprep.subr.bf16.mxu0 %v2319_v10  ;;  %p2563_p6 = pnand %p2562_p4, %p2850_p1  ;;  %s2567_s13 = scalar_lea.vmem %s2566_s10, 64 }
  0xb4   : > { %2050 = vmatpush3.bf16.msra.mxu1 %v2334_v18  ;;  %v2345_v18 = vld [vmem:[#allocation7 + $0xdc] ss:$12 sps:$4 sm:$0xff]   ;;  %p2568_p3 = scmp.lt.s32.totalorder %s3077_s21, %s2566_s10  ;;  %p2569_p7 = scmp.lt.s32.totalorder %s2567_s13, %s2561_s28 }
  0xb5   : > { %2051 = vmatprep.subr.bf16.mxu1 %v2649_v1  ;;  %p2564_p8 = pneg %p2563_p6 }
  0xb6   : > { %535 = vmatpush1.bf16.msra.mxu0 %v2321_v13  ;;  %p2570_p10 = por %p2569_p7, %p2568_p3 }
  0xb7   : > { %536 = vmatprep.subr.bf16.mxu0 %v2322_v14 }
  0xb8   : > { %2052 = vmatpush3.bf16.msra.mxu1 %v2335_v24  ;;  %v2349_v24 = vld [vmem:[#allocation7 + $0xf4] ss:$12 sps:$4 sm:$0xff]   ;;  %p2571_p13 = pnand %p2570_p10, %p2564_p8 }
  0xb9   : > { %2053 = vmatprep.subr.bf16.mxu1 %v2649_v1 }
  0xba   : > { %537 = vmatpush1.bf16.msra.mxu0 %v2324_v15 }
  0xbb   : > { %538 = vmatprep.subr.bf16.mxu0 %v2325_v17 }
  0xbc   : > { %2054 = vmatpush3.bf16.msra.mxu1 %v2336_v28  ;;  %v2347_v28 = vld [vmem:[#allocation7 + $0xf0] ss:$12 sps:$4 sm:$0xff]  }
  0xbd   : > { %2055 = vmatprep.subr.bf16.mxu1 %v2649_v1 }
  0xbe   : > { %539 = vmatpush1.bf16.msra.mxu0 %v2327_v19 }
  0xbf   : > { %540 = vmatprep.subr.bf16.mxu0 %v2328_v23 }
  0xc0   : > { %2056 = vmatpush3.bf16.msra.mxu1 %v2337_v30  ;;  %v2350_v30 = vld [vmem:[#allocation7 + $0xf8] ss:$12 sps:$4 sm:$0xff]  }
  0xc1   : > { %2057 = vmatprep.subr.bf16.mxu1 %v2649_v1 }
  0xc2   : > { %541 = vmatpush1.bf16.msra.mxu0 %v2330_v25  ;;  %v2346_v25 = vld [vmem:[#allocation7 + $0xe0] ss:$12 sps:$4 sm:$0xff]  }
  0xc3   : > { %2063 = vmatprep.subr.bf16.mxu0 %v2649_v1 }
  0xc4   : > { %2058 = vmatpush3.bf16.msra.mxu1 %v2338_v31  ;;  %v2357_v31 = vld [vmem:[#allocation7 + $0x124] ss:$12 sps:$4 sm:$0xff]  }
  0xc5   : > { %559 = vmatmul.mubr.bf16.vlgmr.msra.gmra.mrb[0].mxu0 %v365_v29  ;;  %2069 = vmatprep.subr.bf16.mxu1 %v2649_v1 }
  0xc6   : > { %2065 = vmatprep.mubr.msk.bf16.mxu0 %vm2650_vm0, %v2649_v1 }
  0xc7   : > { %2060 = vmatmul.mubr.bf16.vlgmr.msra.gmra.mrb[0].mxu1 %v365_v29  ;;  %v2353_v29 = vld [vmem:[#allocation7 + $0x10c] ss:$12 sps:$4 sm:$0xff]  }
  0xc8   : > { %2071 = vmatprep.mubr.msk.bf16.mxu1 %vm2650_vm0, %v2649_v1 }
 0x198   : > { %v560_v32 = vpop.f32.mrb[0].mxu0 }
 0x199   : > { %v562_v33 = vpop.f32.mrb[1].mxu0  ;;  %v610_v38 = vpack.c.bf16 %v560_v32, %v560_v32  ;;  %v2354_v32 = vld [vmem:[#allocation7 + $0x110] ss:$12 sps:$4 sm:$0xff]  }
 0x19a   : > { %v612_v34 = vpack.c.bf16 %v562_v33, %v562_v33  ;;  %v564_v35 = vpop.f32.mrb[2].mxu0  ;;  %v603_v40 = vpop.f32.mrb[0].mxu1  ;;  %v2355_v33 = vld [vmem:[#allocation7 + $0x120] ss:$12 sps:$4 sm:$0xff]  }
 0x19b   : > { %v566_v36 = vpop.f32.mrb[3].mxu0  ;;  %v611_v39 = vpack.c.bf16 %v564_v35, %v564_v35  ;;  %v614_v41 = vpack.c.bf16 %v603_v40, %v603_v40  ;;  %v2061_v42 = vpop.f32.mrb[1].mxu1  ;;  %v2358_v35 = vld [vmem:[#allocation7 + $0x128] ss:$12 sps:$4 sm:$0xff]   ;;  %v2366_v40 = vld [vmem:[#allocation7 + $0x158] ss:$12 sps:$4 sm:$0xff]  }
 0x19c   : > { %v613_v37 = vpack.c.bf16 %v566_v36, %v566_v36  ;;  %2064 = vmatpush3.bf16.xpose.msra.mxu0 %v612_v34  ;;  %v606_v43 = vpop.f32.mrb[2].mxu1  ;;  %v2361_v34 = vld [vmem:[#allocation7 + $0x13c] ss:$12 sps:$4 sm:$0xff]   ;;  %v2359_v36 = vld [vmem:[#allocation7 + $0x138] ss:$12 sps:$4 sm:$0xff]  }
 0x19d   : > { %2075 = vmatprep.subr.bf16.mxu0 %v2649_v1  ;;  %v730_v44 = vsel %vm728_vm1, %v614_v41, 0  ;;  %v615_v45 = vpack.c.bf16 %v606_v43, %v606_v43  ;;  %v2062_v46 = vpop.f32.mrb[3].mxu1  ;;  %v2369_v41 = vld [vmem:[#allocation7 + $0x16c] ss:$12 sps:$4 sm:$0xff]   ;;  %v2367_v42 = vld [vmem:[#allocation7 + $0x168] ss:$12 sps:$4 sm:$0xff]  }
 0x19e   : > { %2070 = vmatpush3.bf16.xpose.msra.mxu1 %v613_v37  ;;  %v2362_v37 = vld [vmem:[#allocation7 + $0x140] ss:$12 sps:$4 sm:$0xff]   ;;  %v2370_v43 = vld [vmem:[#allocation7 + $0x170] ss:$12 sps:$4 sm:$0xff]  }
 0x19f   : > { %2081 = vmatprep.subr.bf16.mxu1 %v2649_v1  ;;  %v776_v47 = vsel %vm728_vm1, %v615_v45, 0 }
 0x1a3   : > { %2066 = vmatmul.mubr.bf16.vlgmr.msra.gmra.mrb[4].mxu0 %v610_v38  ;;  %v2365_v38 = vld [vmem:[#allocation7 + $0x154] ss:$12 sps:$4 sm:$0xff]  }
 0x1a4   : > { %2077 = vmatprep.mubr.msk.bf16.mxu0 %vm2650_vm0, %v2649_v1  ;;  %2076 = vmatpush3.bf16.msra.mxu0 %v730_v44 }
 0x1a5   : > { %2072 = vmatmul.mubr.bf16.vlgmr.msra.gmra.mrb[4].mxu1 %v611_v39  ;;  %982 = vmatprep.subr.bf16.mxu0 %v2341_v11  ;;  %v2363_v39 = vld [vmem:[#allocation7 + $0x150] ss:$12 sps:$4 sm:$0xff]  }
 0x1a6   : > { %2083 = vmatprep.mubr.msk.bf16.mxu1 %vm2650_vm0, %v2649_v1  ;;  %2082 = vmatpush3.bf16.msra.mxu1 %v776_v47 }
 0x1a7   : > { %2087 = vmatprep.subr.bf16.mxu1 %v2649_v1 }
 0x276   : > { %v650_v51 = vpop.f32.mrb[4].mxu0 }
 0x277   : > { %v698_v52 = vsel %vm364_vm2, %v650_v51, -inf  ;;  %v2067_v53 = vpop.f32.mrb[5].mxu0 }
 0x278   : > { %v653_v54 = vpop.f32.mrb[6].mxu0  ;;  %v690_v55 = vpop.f32.mrb[4].mxu1  ;;  %v701_v56 = vsel %vm700_vm3, %v698_v52, -inf }
 0x279   : > { %v699_v57 = vsel %vm364_vm2, %v690_v55, -inf  ;;  %702 = vmax.xlane.f32.xlu0 %v701_v56  ;;  %v2068_v58 = vpop.f32.mrb[7].mxu0  ;;  %v2073_v59 = vpop.f32.mrb[5].mxu1 }
 0x27a   : > { %v693_v60 = vpop.f32.mrb[6].mxu1  ;;  %v704_v62 = vsel %vm700_vm3, %v699_v57, -inf }
 0x27b   : > { %v2074_v61 = vpop.f32.mrb[7].mxu1 }
 0x27d   : > { %705 = vmax.xlane.f32.xlu0 %v704_v62 }
 0x306   : > { %v703_v63 = vpop.xlane.xlu0 %702 }
 0x307   : > { %v707_v2 = vsub.f32 %v698_v52, %v703_v63 }
 0x309   : > { %v709_v3 = vmul.f32 1.442695, %v707_v2 }
 0x30a   : > { %v706_v4 = vpop.xlane.xlu0 %705 }
 0x30b   : > { %2403 = vpow2.f32 %v709_v3  ;;  %v708_v5 = vsub.f32 %v699_v57, %v706_v4 }
 0x30d   : > { %v711_v6 = vmul.f32 1.442695, %v708_v5 }
 0x30f   : > { %2405 = vpow2.f32 %v711_v6 }
 0x315   : > { %v2404_v7 = vpop.eup %2403 }
 0x316   : > { %v713_v8 = vsel %vm700_vm3, %v2404_v7, 0.0 }
 0x317   : > { %714 = vadd.xlane.f32.xlu1 %v713_v8 }
 0x319   : > { %v2406_v9 = vpop.eup %2405 }
 0x31a   : > { %v716_v10 = vsel %vm700_vm3, %v2406_v9, 0.0 }
 0x31b   : > { %717 = vadd.xlane.f32.xlu1 %v716_v10 }
 0x3a4   : > { %v715_v12 = vpop.xlane.xlu1 %714 }
 0x3a5   : > { %2407 = vrcp.f32 %v715_v12 }
 0x3a8   : > { %v718_v13 = vpop.xlane.xlu1 %717 }
 0x3a9   : > { %2409 = vrcp.f32 %v718_v13 }
 0x3af   : > { %v2408_v14 = vpop.eup %2407 }
 0x3b0   : > { %v721_v15 = vmul.f32 %v2408_v14, %v2404_v7 }
 0x3b2   : > { %v723_v17 = vpack.c.bf16 %v721_v15, %v721_v15 }
 0x3b3   : > { %v2410_v19 = vpop.eup %2409 }
 0x3b4   : > { %v722_v20 = vmul.f32 %v2410_v19, %v2406_v9  ;;  %2078 = vmatmul.mubr.msk.bf16.vlgmr.msra.gmra.mrb[8].mxu0 %vm700_vm3, %v723_v17 }
 0x3b5   : > { %983 = vmatpush1.bf16.msra.mxu0 %v2339_v16  ;;  %1014 = vmatprep.mubr.bf16.mxu0 %v2648_v0  ;;  %v2351_v0 = vld [vmem:[#allocation7 + $0x108] ss:$12 sps:$4 sm:$0xff]  }
 0x3b6   : > { %v724_v23 = vpack.c.bf16 %v722_v20, %v722_v20  ;;  %984 = vmatprep.subr.bf16.mxu0 %v2345_v18 }
 0x3b8   : > { %2084 = vmatmul.mubr.msk.bf16.vlgmr.msra.gmra.mrb[8].mxu1 %vm700_vm3, %v724_v23 }
 0x3b9   : > { %2088 = vmatpush3.bf16.msra.mxu1 %v2342_v21  ;;  %985 = vmatpush1.bf16.msra.mxu0 %v2343_v22 }
 0x3ba   : > { %2089 = vmatprep.subr.bf16.mxu1 %v2649_v1  ;;  %986 = vmatprep.subr.bf16.mxu0 %v2349_v24 }
 0x3bb   : > { %2103 = vmatprep.mubr.msk.bf16.mxu1 %vm2650_vm0, %v2649_v1 }
 0x3bd   : > { %2090 = vmatpush3.bf16.msra.mxu1 %v2346_v25  ;;  %987 = vmatpush1.bf16.msra.mxu0 %v2347_v28 }
 0x3be   : > { %2091 = vmatprep.subr.bf16.mxu1 %v2649_v1  ;;  %988 = vmatprep.subr.bf16.mxu0 %v2353_v29 }
 0x3c1   : > { %2092 = vmatpush3.bf16.msra.mxu1 %v2350_v30  ;;  %989 = vmatpush1.bf16.msra.mxu0 %v2351_v0 }
 0x3c2   : > { %2093 = vmatprep.subr.bf16.mxu1 %v2649_v1  ;;  %990 = vmatprep.subr.bf16.mxu0 %v2357_v31 }
 0x3c5   : > { %2094 = vmatpush3.bf16.msra.mxu1 %v2354_v32  ;;  %991 = vmatpush1.bf16.msra.mxu0 %v2355_v33 }
 0x3c6   : > { %2095 = vmatprep.subr.bf16.mxu1 %v2649_v1  ;;  %992 = vmatprep.subr.bf16.mxu0 %v2361_v34 }
 0x3c9   : > { %2096 = vmatpush3.bf16.msra.mxu1 %v2358_v35  ;;  %993 = vmatpush1.bf16.msra.mxu0 %v2359_v36  ;;  %v2371_v35 = vld [vmem:[#allocation8] sm:$0xff]  }
 0x3ca   : > { %2097 = vmatprep.subr.bf16.mxu1 %v2649_v1  ;;  %994 = vmatprep.subr.bf16.mxu0 %v2365_v38 }
 0x3cd   : > { %2098 = vmatpush3.bf16.msra.mxu1 %v2362_v37  ;;  %995 = vmatpush1.bf16.msra.mxu0 %v2363_v39  ;;  %v2372_v39 = vld [vmem:[#allocation8 + $0x8] sm:$0xff]  }
 0x3ce   : > { %2099 = vmatprep.subr.bf16.mxu1 %v2649_v1  ;;  %996 = vmatprep.subr.bf16.mxu0 %v2369_v41  ;;  %v2374_v41 = vld [vmem:[#allocation8 + $0x18] sm:$0xff]  }
 0x3d1   : > { %2100 = vmatpush3.bf16.msra.mxu1 %v2366_v40  ;;  %997 = vmatpush1.bf16.msra.mxu0 %v2367_v42  ;;  %v2373_v40 = vld [vmem:[#allocation8 + $0x10] sm:$0xff]   ;;  %v2375_v42 = vld [vmem:[#allocation8 + $0x20] sm:$0xff]  }
 0x3d2   : > { %2101 = vmatprep.subr.bf16.mxu1 %v2649_v1  ;;  %2107 = vmatprep.subr.bf16.mxu0 %v2649_v1 }
 0x3d5   : > { %2102 = vmatpush3.bf16.msra.mxu1 %v2370_v43  ;;  %v2376_v43 = vld [vmem:[#allocation8 + $0x28] sm:$0xff]  }
 0x3d6   : > { %2113 = vmatprep.subr.bf16.mxu1 %v2649_v1 }
 0x487   : > { %v766_v44 = vpop.f32.mrb[8].mxu0 }
 0x488   : > { %v2079_v45 = vpop.f32.mrb[9].mxu0  ;;  %v2985_v51 = vadd.f32 %v766_v44, %v2927_v26  ;;  %v2377_v44 = vld [vmem:[#allocation8 + $0x30] sm:$0xff]  }
 0x489   : > { %v769_v46 = vpop.f32.mrb[10].mxu0  ;;  %v2378_v45 = vld [vmem:[#allocation8 + $0x38] sm:$0xff]  }
 0x48a   : > { %v2080_v47 = vpop.f32.mrb[11].mxu0  ;;  %v2379_v46 = vld [vmem:[#allocation8 + $0x40] sm:$0xff]  }
 0x48b   : > { %v812_v48 = vpop.f32.mrb[8].mxu1  ;;  %v2380_v47 = vld [vmem:[#allocation8 + $0x48] sm:$0xff]  }
 0x48c   : > { %v2988_v52 = vadd.f32 %v812_v48, %v2929_v27  ;;  %v2085_v53 = vpop.f32.mrb[9].mxu1  ;;  %v2381_v48 = vld [vmem:[#allocation8 + $0x50] sm:$0xff]  }
 0x48d   : > { %v815_v54 = vpop.f32.mrb[10].mxu1  ;;  %v2382_v53 = vld [vmem:[#allocation8 + $0x58] sm:$0xff]  }
 0x48e   : > { %v820_v55 = vpack.c.bf16 %v2988_v52, %v2985_v51  ;;  %v2086_v56 = vpop.f32.mrb[11].mxu1  ;;  %v2383_v54 = vld [vmem:[#allocation8 + $0x60] sm:$0xff]  }
 0x490   : > { %1015 = vmatmul.mubr.bf16.vlgmr.msra.gmra.mrb[12].mxu0 %v820_v55  ;;  %2104 = vmatmul.mubr.bf16.vlgmr.msra.gmra.mrb[12].mxu1 %v820_v55  ;;  %v2384_v55 = vld [vmem:[#allocation8 + $0x68] sm:$0xff]  }
 0x491   : > { %2109 = vmatprep.mubr.msk.bf16.mxu0 %vm2650_vm0, %v2649_v1  ;;  %2115 = vmatprep.mubr.msk.bf16.mxu1 %vm2650_vm0, %v2649_v1 }
 0x563   : > { %v1016_v57 = vpop.f32.mrb[12].mxu0  ;;  %v1059_v26 = vpop.f32.mrb[12].mxu1 }
 0x564   : > { %v1018_v58 = vpop.f32.mrb[13].mxu0  ;;  %v2105_v59 = vpop.f32.mrb[13].mxu1  ;;  %v1070_v3 = vpack.c.bf16 %v1059_v26, %v1059_v26  ;;  %v1066_v4 = vpack.c.bf16 %v1016_v57, %v1016_v57 }
 0x565   : > { %v1068_v27 = vpack.c.bf16 %v1018_v58, %v1018_v58  ;;  %v1020_v60 = vpop.f32.mrb[14].mxu0  ;;  %v1062_v61 = vpop.f32.mrb[14].mxu1 }
 0x566   : > { %v1022_v62 = vpop.f32.mrb[15].mxu0  ;;  %v2106_v63 = vpop.f32.mrb[15].mxu1  ;;  %v1071_v5 = vpack.c.bf16 %v1062_v61, %v1062_v61  ;;  %v1182_v6 = vsel %vm728_vm1, %v1070_v3, 0  ;;  %v1067_v7 = vpack.c.bf16 %v1020_v60, %v1020_v60 }
 0x567   : > { %v1069_v2 = vpack.c.bf16 %v1022_v62, %v1022_v62  ;;  %2108 = vmatpush3.bf16.xpose.msra.mxu0 %v1068_v27 }
 0x568   : > { %2119 = vmatprep.subr.bf16.mxu0 %v2649_v1  ;;  %v1228_v8 = vsel %vm728_vm1, %v1071_v5, 0 }
 0x569   : > { %2114 = vmatpush3.bf16.xpose.msra.mxu1 %v1069_v2 }
 0x56a   : > { %2125 = vmatprep.subr.bf16.mxu1 %v2649_v1 }
 0x56e   : > { %2110 = vmatmul.mubr.bf16.vlgmr.msra.gmra.mrb[16].mxu0 %v1066_v4 }
 0x56f   : > { %2120 = vmatpush3.bf16.msra.mxu0 %v1182_v6  ;;  %2121 = vmatprep.mubr.msk.bf16.mxu0 %vm2650_vm0, %v2649_v1 }
 0x570   : > { %2116 = vmatmul.mubr.bf16.vlgmr.msra.gmra.mrb[16].mxu1 %v1067_v7  ;;  %2131 = vmatprep.subr.bf16.mxu0 %v2649_v1 }
 0x571   : > { %2126 = vmatpush3.bf16.msra.mxu1 %v1228_v8  ;;  %2127 = vmatprep.mubr.msk.bf16.mxu1 %vm2650_vm0, %v2649_v1 }
 0x572   : > { %2151 = vmatprep.subr.bf16.mxu1 %v2649_v1 }
 0x641   : > { %v1106_v9 = vpop.f32.mrb[16].mxu0 }
 0x642   : > { %v1152_v10 = vsel %vm364_vm2, %v1106_v9, -inf  ;;  %v2111_v11 = vpop.f32.mrb[17].mxu0 }
 0x643   : > { %v1109_v12 = vpop.f32.mrb[18].mxu0  ;;  %v1146_v13 = vpop.f32.mrb[16].mxu1  ;;  %v1154_v14 = vsel %vm700_vm3, %v1152_v10, -inf  ;;  %v2388_v11 = vld [vmem:[#allocation8 + $0x88] sm:$0xff]  }
 0x644   : > { %v1153_v15 = vsel %vm364_vm2, %v1146_v13, -inf  ;;  %1155 = vmax.xlane.f32.xlu0 %v1154_v14  ;;  %v2112_v16 = vpop.f32.mrb[19].mxu0  ;;  %v2117_v17 = vpop.f32.mrb[17].mxu1  ;;  %v2389_v12 = vld [vmem:[#allocation8 + $0x90] sm:$0xff]   ;;  %v2390_v13 = vld [vmem:[#allocation8 + $0x98] sm:$0xff]   ;;  %v2391_v14 = vld [vmem:[#allocation8 + $0xa0] sm:$0xff]  }
 0x645   : > { %v1149_v18 = vpop.f32.mrb[18].mxu1  ;;  %v1157_v19 = vsel %vm700_vm3, %v1153_v15, -inf  ;;  %v1930_v16 = vld [vmem:[%s3123_s4] ss:$0 sm:$0xff] }
 0x646   : > { %1158 = vmax.xlane.f32.xlu1 %v1157_v19  ;;  %v2118_v20 = vpop.f32.mrb[19].mxu1 }
 0x6d1   : > { %v1156_v21 = vpop.xlane.xlu0 %1155 }
 0x6d2   : > { %v1160_v22 = vsub.f32 %v1152_v10, %v1156_v21  ;;  %v2387_v10 = vld [vmem:[#allocation8 + $0x80] sm:$0xff]  }
 0x6d3   : > { %v1159_v23 = vpop.xlane.xlu1 %1158 }
 0x6d4   : > { %v1162_v24 = vmul.f32 1.442695, %v1160_v22  ;;  %v1161_v25 = vsub.f32 %v1153_v15, %v1159_v23  ;;  %v2392_v15 = vld [vmem:[#allocation8 + $0xa8] sm:$0xff]  }
 0x6d6   : > { %2411 = vpow2.f32 %v1162_v24  ;;  %v1164_v28 = vmul.f32 1.442695, %v1161_v25  ;;  %v2393_v24 = vld [vmem:[#allocation8 + $0xb0] sm:$0xff]   ;;  %v2394_v25 = vld [vmem:[#allocation8 + $0xb8] sm:$0xff]  }
 0x6d8   : > { %2413 = vpow2.f32 %v1164_v28  ;;  %v2395_v28 = vld [vmem:[#allocation10] sm:$0xff]  }
 0x6e0   : > { %v2412_v29 = vpop.eup %2411 }
 0x6e1   : > { %v1166_v49 = vsel %vm700_vm3, %v2412_v29, 0.0 }
 0x6e2   : > { %v2414_v50 = vpop.eup %2413  ;;  %1167 = vadd.xlane.f32.xlu0 %v1166_v49  ;;  %v2397_v49 = vld [vmem:[#allocation10 + $0x10] sm:$0xff]  }
 0x6e3   : > { %v1169_v30 = vsel %vm700_vm3, %v2414_v50, 0.0 }
 0x6e4   : > { %1170 = vadd.xlane.f32.xlu1 %v1169_v30  ;;  %v2399_v30 = vld [vmem:[#allocation10 + $0x20] sm:$0xff]  }
 0x76f   : > { %v1168_v0 = vpop.xlane.xlu0 %1167 }
 0x770   : > { %2415 = vrcp.f32 %v1168_v0  ;;  %v2400_v0 = vld [vmem:[#allocation10 + $0x28] sm:$0xff]  }
 0x771   : > { %v1171_v31 = vpop.xlane.xlu1 %1170 }
 0x772   : > { %2417 = vrcp.f32 %v1171_v31  ;;  %v1940_v31 = vld [vmem:[%s3123_s4 + $0x1] ss:$0 sm:$0xff] }
 0x77a   : > { %v2416_v32 = vpop.eup %2415 }
 0x77b   : > { %v1174_v33 = vmul.f32 %v2416_v32, %v2412_v29  ;;  %v2396_v29 = vld [vmem:[#allocation10 + $0x8] sm:$0xff]  }
 0x77c   : > { %v2418_v34 = vpop.eup %2417 }
 0x77d   : > { %v1176_v36 = vpack.c.bf16 %v1174_v33, %v1174_v33  ;;  %v1175_v37 = vmul.f32 %v2418_v34, %v2414_v50  ;;  %v2398_v50 = vld [vmem:[#allocation10 + $0x18] sm:$0xff]  }
 0x77f   : > { %v1177_v38 = vpack.c.bf16 %v1175_v37, %v1175_v37  ;;  %2122 = vmatmul.mubr.msk.bf16.vlgmr.msra.gmra.mrb[20].mxu0 %vm700_vm3, %v1176_v36 }
 0x780   : > { %2132 = vmatpush3.bf16.msra.mxu0 %v2371_v35  ;;  %2147 = vmatprep.mubr.msk.bf16.mxu0 %vm2650_vm0, %v2649_v1 }
 0x781   : > { %2128 = vmatmul.mubr.msk.bf16.vlgmr.msra.gmra.mrb[20].mxu1 %vm700_vm3, %v1177_v38  ;;  %2133 = vmatprep.subr.bf16.mxu0 %v2649_v1 }
 0x782   : > { %2167 = vmatprep.mubr.msk.bf16.mxu1 %vm2650_vm0, %v2649_v1  ;;  %2152 = vmatpush3.bf16.msra.mxu1 %v2379_v46 }
 0x783   : > { %2153 = vmatprep.subr.bf16.mxu1 %v2649_v1 }
 0x784   : > { %2134 = vmatpush3.bf16.msra.mxu0 %v2372_v39  ;;  %v2401_v39 = vld [vmem:[#allocation10 + $0x30] sm:$0xff]  }
 0x785   : > { %2135 = vmatprep.subr.bf16.mxu0 %v2649_v1 }
 0x786   : > { %2154 = vmatpush3.bf16.msra.mxu1 %v2380_v47 }
 0x787   : > { %2155 = vmatprep.subr.bf16.mxu1 %v2649_v1 }
 0x788   : > { %2136 = vmatpush3.bf16.msra.mxu0 %v2373_v40  ;;  %v2402_v40 = vld [vmem:[#allocation10 + $0x38] sm:$0xff]  }
 0x789   : > { %2137 = vmatprep.subr.bf16.mxu0 %v2649_v1 }
 0x78a   : > { %2156 = vmatpush3.bf16.msra.mxu1 %v2381_v48 }
 0x78b   : > { %2157 = vmatprep.subr.bf16.mxu1 %v2649_v1 }
 0x78c   : > { %2138 = vmatpush3.bf16.msra.mxu0 %v2374_v41  ;;  %v1950_v41 = vld [vmem:[%s3123_s4 + $0x2] ss:$0 sm:$0xff] }
 0x78d   : > { %2139 = vmatprep.subr.bf16.mxu0 %v2649_v1 }
 0x78e   : > { %2158 = vmatpush3.bf16.msra.mxu1 %v2382_v53 }
 0x78f   : > { %2159 = vmatprep.subr.bf16.mxu1 %v2649_v1 }
 0x790   : > { %2140 = vmatpush3.bf16.msra.mxu0 %v2375_v42 }
 0x791   : > { %2141 = vmatprep.subr.bf16.mxu0 %v2649_v1 }
 0x792   : > { %2160 = vmatpush3.bf16.msra.mxu1 %v2383_v54 }
 0x793   : > { %2161 = vmatprep.subr.bf16.mxu1 %v2649_v1 }
 0x794   : > { %2142 = vmatpush3.bf16.msra.mxu0 %v2376_v43 }
 0x795   : > { %2143 = vmatprep.subr.bf16.mxu0 %v2649_v1 }
 0x796   : > { %2162 = vmatpush3.bf16.msra.mxu1 %v2384_v55 }
 0x797   : > { %2163 = vmatprep.subr.bf16.mxu1 %v2649_v1 }
 0x798   : > { %2144 = vmatpush3.bf16.msra.mxu0 %v2377_v44 }
 0x799   : > { %2145 = vmatprep.subr.bf16.mxu0 %v2649_v1 }
 0x79c   : > { %2146 = vmatpush3.bf16.msra.mxu0 %v2378_v45 }
 0x79d   : > { %2171 = vmatprep.subr.bf16.mxu0 %v2649_v1 }
 0x852   : > { %v1218_v56 = vpop.f32.mrb[20].mxu0 }
 0x853   : > { %v1270_v57 = vadd.f32 %v1218_v56, %v2985_v51  ;;  %v2123_v26 = vpop.f32.mrb[21].mxu0  ;;  %v2385_v51 = vld [vmem:[#allocation8 + $0x70] sm:$0xff]  }
 0x854   : > { %v1221_v58 = vpop.f32.mrb[22].mxu0  ;;  %v1264_v59 = vpop.f32.mrb[20].mxu1  ;;  %2164 = vmatpush3.bf16.msra.mxu1 %v2385_v51 }
 0x855   : > { %v1272_v27 = vpack.c.bf16 %v1270_v57, %v1270_v57  ;;  %v1271_v60 = vadd.f32 %v1264_v59, %v2988_v52  ;;  %v2124_v61 = vpop.f32.mrb[23].mxu0  ;;  %v2129_v62 = vpop.f32.mrb[21].mxu1  ;;  %2165 = vmatprep.subr.bf16.mxu1 %v2649_v1  ;;  %v2386_v52 = vld [vmem:[#allocation8 + $0x78] sm:$0xff]  }
 0x856   : > { %v1267_v63 = vpop.f32.mrb[22].mxu1 }
 0x857   : > { %v1299_v2 = vunpack.c.l.b16 %v1272_v27  ;;  %v1273_v3 = vpack.c.bf16 %v1271_v60, %v1271_v60  ;;  %v2130_v4 = vpop.f32.mrb[23].mxu1 }
 0x858   : > { %2166 = vmatpush3.bf16.msra.mxu1 %v2386_v52 }
 0x859   : > { %v1300_v5 = vunpack.c.l.b16 %v1273_v3  ;;  %v1301_v6 = vrot.slane %v1299_v2, 7  ;;  %2191 = vmatprep.subr.bf16.mxu1 %v2649_v1 }
 0x85b   : > { %v1302_v7 = vrot.slane %v1300_v5, 6 }
 0x85d   : > { %v1304_v8 = vsel %vm1303_vm4, %v1302_v7, %v1301_v6 }
 0x85e   : > { %v1305_v9 = vpack.c.b16 %v1304_v8, %v1304_v8 }
 0x860   : > { %2148 = vmatmul.mubr.bf16.vlgmr.msra.gmra.mrb[24].mxu0 %v1305_v9 }
 0x861   : > { %2187 = vmatprep.mubr.msk.bf16.mxu0 %vm2650_vm0, %v2649_v1  ;;  %2172 = vmatpush3.bf16.msra.mxu0 %v2387_v10 }
 0x862   : > { %2173 = vmatprep.subr.bf16.mxu0 %v2649_v1 }
 0x865   : > { %2174 = vmatpush3.bf16.msra.mxu0 %v2388_v11 }
 0x866   : > { %2175 = vmatprep.subr.bf16.mxu0 %v2649_v1 }
 0x869   : > { %2176 = vmatpush3.bf16.msra.mxu0 %v2389_v12 }
 0x86a   : > { %2177 = vmatprep.subr.bf16.mxu0 %v2649_v1 }
 0x86d   : > { %2178 = vmatpush3.bf16.msra.mxu0 %v2390_v13 }
 0x86e   : > { %2179 = vmatprep.subr.bf16.mxu0 %v2649_v1 }
 0x871   : > { %2180 = vmatpush3.bf16.msra.mxu0 %v2391_v14 }
 0x872   : > { %2181 = vmatprep.subr.bf16.mxu0 %v2649_v1 }
 0x875   : > { %2182 = vmatpush3.bf16.msra.mxu0 %v2392_v15 }
 0x876   : > { %2183 = vmatprep.subr.bf16.mxu0 %v2649_v1 }
 0x879   : > { %2184 = vmatpush3.bf16.msra.mxu0 %v2393_v24 }
 0x87a   : > { %2185 = vmatprep.subr.bf16.mxu0 %v2649_v1 }
 0x87d   : > { %2186 = vmatpush3.bf16.msra.mxu0 %v2394_v25 }
 0x933   : > { %v1389_v17 = vpop.f32.mrb[24].mxu0 }
 0x934   : > { %v1390_v18 = vadd.f32 %v1930_v16, %v1389_v17  ;;  %v2149_v19 = vpop.f32.mrb[25].mxu0 }
 0x935   : > { %v1392_v20 = vpop.f32.mrb[26].mxu0 }
 0x936   : > { %v1395_v21 = vmax.f32 %v1390_v18, 0.0  ;;  %v2150_v22 = vpop.f32.mrb[27].mxu0 }
 0x938   : > { %v1396_v23 = vpack.c.bf16 %v1395_v21, %v1395_v21 }
 0x93a   : > { %2168 = vmatmul.mubr.bf16.vlgmr.msra.gmra.mrb[24].mxu1 %v1396_v23 }
 0x93b   : > { %2207 = vmatprep.mubr.msk.bf16.mxu1 %vm2650_vm0, %v2649_v1  ;;  %2192 = vmatpush3.bf16.msra.mxu1 %v2395_v28 }
 0x93c   : > { %2193 = vmatprep.subr.bf16.mxu1 %v2649_v1 }
 0x93f   : > { %2194 = vmatpush3.bf16.msra.mxu1 %v2396_v29 }
 0x940   : > { %2195 = vmatprep.subr.bf16.mxu1 %v2649_v1 }
 0x943   : > { %2196 = vmatpush3.bf16.msra.mxu1 %v2397_v49 }
 0x944   : > { %2197 = vmatprep.subr.bf16.mxu1 %v2649_v1 }
 0x947   : > { %2198 = vmatpush3.bf16.msra.mxu1 %v2398_v50 }
 0x948   : > { %2199 = vmatprep.subr.bf16.mxu1 %v2649_v1 }
 0x94b   : > { %2200 = vmatpush3.bf16.msra.mxu1 %v2399_v30 }
 0x94c   : > { %2201 = vmatprep.subr.bf16.mxu1 %v2649_v1 }
 0x94f   : > { %2202 = vmatpush3.bf16.msra.mxu1 %v2400_v0 }
 0x950   : > { %2203 = vmatprep.subr.bf16.mxu1 %v2649_v1 }
 0x953   : > { %2204 = vmatpush3.bf16.msra.mxu1 %v2401_v39 }
 0x954   : > { %2205 = vmatprep.subr.bf16.mxu1 %v2649_v1  ;;  %v1959_v1 = vld [vmem:[%s3125_s6] ss:$0 sm:$0xff] }
 0x957   : > { %2206 = vmatpush3.bf16.msra.mxu1 %v2402_v40 }
 0xa0d   : > { %v1504_v32 = vpop.f32.mrb[24].mxu1 }
 0xa0e   : > { %v1505_v33 = vadd.f32 %v1940_v31, %v1504_v32  ;;  %v2169_v34 = vpop.f32.mrb[25].mxu1 }
 0xa0f   : > { %v1507_v35 = vpop.f32.mrb[26].mxu1 }
 0xa10   : > { %v1510_v36 = vmax.f32 %v1505_v33, 0.0  ;;  %v2170_v37 = vpop.f32.mrb[27].mxu1 }
 0xa12   : > { %v1511_v38 = vpack.c.bf16 %v1510_v36, %v1510_v36 }
 0xa14   : > { %2188 = vmatmul.mubr.bf16.vlgmr.msra.gmra.mrb[28].mxu0 %v1511_v38 }
 0xae7   : > { %v1619_v42 = vpop.f32.mrb[28].mxu0 }
 0xae8   : > { %v1620_v43 = vadd.f32 %v1950_v41, %v1619_v42  ;;  %v2189_v44 = vpop.f32.mrb[29].mxu0 }
 0xae9   : > { %v1622_v45 = vpop.f32.mrb[30].mxu0 }
 0xaea   : > { %v1625_v46 = vmax.f32 %v1620_v43, 0.0  ;;  %v2190_v47 = vpop.f32.mrb[31].mxu0 }
 0xaec   : > { %v1626_v48 = vpack.c.bf16 %v1625_v46, %v1625_v46 }
 0xaee   : > { %2208 = vmatmul.mubr.bf16.vlgmr.msra.gmra.mrb[28].mxu1 %v1626_v48 }
 0xbc1   : > { %v1732_v53 = vpop.f32.mrb[28].mxu1 }
 0xbc2   : > { %v1733_v54 = vadd.f32 %v1959_v1, %v1732_v53  ;;  %v2209_v55 = vpop.f32.mrb[29].mxu1 }
 0xbc3   : > { %v1735_v56 = vpop.f32.mrb[30].mxu1 }
 0xbc4   : > { %1738 = vst [vmem:[%s352_s17] sm:$0x3] %v1733_v54  ;;  %v2210_v57 = vpop.f32.mrb[31].mxu1 }
 0xbc5   : > { %2574 = shalt.err (!%p2571_p13)
}
 0xbc6   : > { %s2575_s23 = scalar_lea.hbm %s3075_s30, 32  ;;  %s2579_s16 = scalar_lea.hbm %s3126_s7, 64 }
 0xbc7   : > { %p2576_p0 = scmp.ne.s32.totalorder %s3075_s30, %s2575_s23  ;;  %p2580_p9 = scmp.lt.u32.totalorder %s3075_s30, %s3126_s7 }
 0xbc8   : > { %p2581_p12 = scmp.lt.u32.totalorder %s2579_s16, %s2575_s23  ;;  %p2583_p4 = scmp.lt.u32.totalorder %s2575_s23, %s3075_s30 }
 0xbc9   : > { %p2577_p5 = pnand %p2576_p0, %p2850_p1 }
 0xbca   : > { %p2582_p2 = por %p2581_p12, %p2580_p9 }
 0xbcb   : > { %p2578_p11 = pneg %p2577_p5 }
 0xbcc   : > { %p2584_p6 = por %p2583_p4, %p2582_p2 }
 0xbce   : > { %p2585_p8 = pnand %p2584_p6, %p2578_p11 }
 0xbd0   : > { %2588 = shalt.err (!%p2585_p8)
}
 0xbd1   : > { %2229 = dma.vmem_to_hbm [thread:$0]  (%p2850_p1), %s3077_s21, 32, %s3075_s30, %s1740_s9  }
 0xbd2 PF: > { %s1765_s17 = sand.u32 1, %s2623_s24   ;;  %p3150_p3 = scmp.ne.s32.totalorder %s3134_s8, 0 }
 0xbd3   : > { %p3151_p7 = scmp.ge.s32.totalorder %s2635_s27, 2  ;;  %s1766_s29 = scalar_lea.sflag [#allocation4], %s1765_s17 }
 0xbd5   : > { %p2249_p10 = pnand %p3151_p7, %p3150_p3 }
 0xbd7   : > { %2618 = dma.done.wait (!%p2249_p10), %s1766_s29, 32  }
 0xbd8   : > { %2620 = vsyncadd (!%p2249_p10), %s1766_s29, 4294967264  ;;  %p22_p13 = scmp.ge.s32.totalorder %s2840_s22, 4   ;;  %s3152_s24 = smov %s2627_s25 }
 0xbd9   : > { %s3153_s25 = smov %s2631_s26  ;;  %s3154_s26 = smov %s2856_s19 }
 0xbda   : > { %s3155_s27 = smov %s2840_s22  ;;  %24 = sbr.rel (!%p22_p13) target bundleno = 9 (0x9), region = 114 }
 0xbe1   :  { %1771 = vsyncpa [#allocation3], 1 }
 0xbe2   :  { %1773 = vsyncpa [#allocation3 + $0x1], 1 }
 0xbe3   :  { %1774 = vsyncpa [#allocation6], 1 }
 0xbe4   :  { %1775 = vsyncpa [#allocation9], 1 }
 0xbe5   :  { %1776 = vsyncpa [#allocation4], 1 }
 0xbe6   :  { %1778 = vsyncpa [#allocation4 + $0x1], 1 }

</bundles_post_ra>
